<compile_context>
chip_gen: v5e
topology: v5e:2x2
jax: 0.10.0
libtpu: 0.0.40
codegen_flags: <defaults>
</compile_context>

<pallas_src>
import jax
import jax.numpy as jnp
import numpy as np
from jax.experimental import pallas as pl
from jax.experimental.pallas import tpu as pltpu


def _decoder_fused_kernel(cap_ref, feat_ref, emb_ref, w_ih_ref, w_hh_ref, b_ref,
                          w_out_ref, b_out_ref, out_ref):
    """One invocation: embedding gather + concat + LSTM recurrence + vocab projection.

    cap_ref:   (B, L)   int32   caption token ids (last token unused, as in the PyTorch model)
    feat_ref:  (B, E)   f32     image features (t = 0 input)
    emb_ref:   (V, E)   bf16    embedding table (VMEM resident at toy V)
    w_ih_ref:  (E, 4H)  bf16    gate order i, f, g, o (PyTorch)
    w_hh_ref:  (H, 4H)  bf16
    b_ref:     (1, 4H)  f32     b_ih + b_hh
    w_out_ref: (H, V)   bf16
    b_out_ref: (1, V)   f32
    out_ref:   (B, L, V) f32    logits, batch-major, written once (lane-dense, V = 128)
    """
    B, L = cap_ref.shape
    T = L                              # seq len = 1 (features) + (L-1) embedded tokens
    V, E = emb_ref.shape
    H = w_hh_ref.shape[0]
    H4 = 4 * H

    w_ih = w_ih_ref[...]
    w_hh = w_hh_ref[...]
    b = b_ref[...]
    w_out = w_out_ref[...]
    b_out = b_out_ref[...]

    # ---- fused embedding gather (exact one-hot MXU matmul) + bf16 cast -------------------
    cap = cap_ref[...][:, :L - 1]                                          # (B, T-1) int32
    iota_v = jax.lax.broadcasted_iota(jnp.int32, (B, T - 1, V), 2)
    onehot = (cap[:, :, None] == iota_v).astype(jnp.bfloat16)              # (B, T-1, V)
    onehot = onehot.reshape(B * (T - 1), V)
    # One exact nonzero per row -> gather of the bf16 table rows, bit-exact.
    embeds = jnp.dot(onehot, emb_ref[...],
                     preferred_element_type=jnp.float32)                   # (B*(T-1), E)
    embeds = embeds.astype(jnp.bfloat16)                                   # exact (bf16 values)

    # ---- input projection + bias hoisted out of the recurrence (one MXU pass) ------------
    feat = feat_ref[...].astype(jnp.bfloat16)                              # (B, E)
    gx0 = jnp.dot(feat, w_ih, preferred_element_type=jnp.float32) + b      # (B, 4H)  t = 0
    gxc = jnp.dot(embeds, w_ih, preferred_element_type=jnp.float32) + b    # (B*(T-1), 4H)
    gxc = gxc.reshape(B, T - 1, H4)                                        # t = 1 .. T-1

    # ---- LSTM recurrence: only h @ w_hh + gate math on the serial path -------------------
    h = jnp.zeros((B, H), jnp.float32)
    c = jnp.zeros((B, H), jnp.float32)
    hs_list = []
    for t in range(T):                 # T is small & static -> fully unrolled
        gx = gx0 if t == 0 else gxc[:, t - 1, :]                           # (B, 4H)
        gates = gx + jnp.dot(h.astype(jnp.bfloat16), w_hh,
                             preferred_element_type=jnp.float32)           # (B, 4H) f32
        sig_if = jax.nn.sigmoid(gates[:, 0:2 * H])                         # i | f
        i_g = sig_if[:, 0:H]
        f_g = sig_if[:, H:2 * H]
        g_g = jnp.tanh(gates[:, 2 * H:3 * H])
        o_g = jax.nn.sigmoid(gates[:, 3 * H:4 * H])
        c = f_g * c + i_g * g_g
        h = o_g * jnp.tanh(c)
        hs_list.append(h)              # stays in vregs (~T vregs), no VMEM round trip

    # ---- hidden2vocab: ONE (B*T, H) x (H, V) MXU matmul, one lane-dense output write ------
    hs = jnp.stack(hs_list, axis=1).reshape(B * T, H).astype(jnp.bfloat16)  # (B*T, H)
    logits = jnp.dot(hs, w_out, preferred_element_type=jnp.float32) + b_out  # (B*T, V) f32
    out_ref[...] = logits.reshape(B, T, V)


def lstm_decoder_pallas(captions, features, emb_bf16, w_ih, w_hh, b, w_out, b_out):
    """captions [B, L] int32, features [B, E] f32 -> logits [B, L, V] f32 (batch-major)."""
    B, L = captions.shape
    V, E = emb_bf16.shape
    H = w_hh.shape[0]
    T = L

    flops = (2 * B * (T - 1) * V * E          # one-hot gather matmul
             + 2 * B * T * E * 4 * H          # hoisted input projection
             + 2 * B * T * H * 4 * H          # recurrent matmuls
             + 2 * B * T * H * V)             # vocab projection
    transcendentals = B * T * 5 * H           # sigmoid(3H) + tanh(H) + tanh(H) per row/step
    bytes_accessed = (B * L * 4 + B * E * 4               # captions + features
                      + V * E * 2                         # bf16 embedding table
                      + (E * 4 * H + H * 4 * H + H * V) * 2   # bf16 weights
                      + (4 * H + V) * 4                   # f32 biases
                      + B * T * V * 4)                    # f32 logits

    return pl.pallas_call(
        _decoder_fused_kernel,
        out_shape=jax.ShapeDtypeStruct((B, T, V), jnp.float32),
        # Grid-less single invocation: everything (a few tens of KiB) is VMEM resident; no
        # per-step pipeline overhead, no redundant double-buffering of constant weights.
        in_specs=[pl.BlockSpec(memory_space=pltpu.MemorySpace.VMEM)] * 8,
        out_specs=pl.BlockSpec(memory_space=pltpu.MemorySpace.VMEM),
        cost_estimate=pl.CostEstimate(flops=flops,
                                      transcendentals=transcendentals,
                                      bytes_accessed=bytes_accessed),
        compiler_params=pltpu.CompilerParams(vmem_limit_bytes=32 * 1024 * 1024),
    )(captions, features, emb_bf16, w_ih, w_hh, b, w_out, b_out)


class DecoderRNNPallas:
    """JAX/Pallas port of the PyTorch DecoderRNN forward pass (num_layers=1)."""

    def __init__(self, embed_size, hidden_size, vocab_size, key):
        self.embed_size = embed_size
        self.hidden_size = hidden_size
        self.vocab_size = vocab_size
        ks = jax.random.split(key, 7)
        s = 1.0 / np.sqrt(hidden_size)
        # f32 master parameters (mirror the fp32 PyTorch module)
        self.embedding = jax.random.normal(ks[0], (vocab_size, embed_size), jnp.float32)
        self.w_ih = jax.random.uniform(ks[1], (embed_size, 4 * hidden_size),
                                       jnp.float32, -s, s)
        self.w_hh = jax.random.uniform(ks[2], (hidden_size, 4 * hidden_size),
                                       jnp.float32, -s, s)
        b_ih = jax.random.uniform(ks[3], (4 * hidden_size,), jnp.float32, -s, s)
        b_hh = jax.random.uniform(ks[4], (4 * hidden_size,), jnp.float32, -s, s)
        self.b = (b_ih + b_hh).reshape(1, 4 * hidden_size)
        self.w_out = jax.random.uniform(ks[5], (hidden_size, vocab_size),
                                        jnp.float32, -s, s)
        self.b_out = jax.random.uniform(ks[6], (1, vocab_size), jnp.float32, -s, s)
        # bf16 copies (cast once at init -> zero per-call wrapper dispatches)
        self.embedding_bf16 = self.embedding.astype(jnp.bfloat16)
        self.w_ih_bf16 = self.w_ih.astype(jnp.bfloat16)
        self.w_hh_bf16 = self.w_hh.astype(jnp.bfloat16)
        self.w_out_bf16 = self.w_out.astype(jnp.bfloat16)

    def forward(self, features, captions):
        """features: [B, E] f32, captions: [B, L] int32 -> logits [B, L, V] f32.
        Gather / concat / casts are all fused into the kernel: no wrapper-side XLA ops."""
        return lstm_decoder_pallas(captions, features, self.embedding_bf16,
                                   self.w_ih_bf16, self.w_hh_bf16, self.b,
                                   self.w_out_bf16, self.b_out)

    # ---------------- references (pure JAX, strictly f32 dots — no bf16 dot anywhere) -------

    def _reference(self, features, captions, quantize):
        """f32-compute reference. If quantize=True, every matmul operand is rounded to bf16
        VALUES (upcast back to f32 before the dot) to match the kernel's MXU numerics."""
        q = (lambda a: a.astype(jnp.bfloat16).astype(jnp.float32)) if quantize else (lambda a: a)
        hi = jax.lax.Precision.HIGHEST
        H = self.hidden_size
        B = features.shape[0]
        w_ih, w_hh, w_out = q(self.w_ih), q(self.w_hh), q(self.w_out)

        embeds = jnp.take(q(self.embedding), captions[:, :-1], axis=0)        # [B, L-1, E]
        x = jnp.concatenate([q(features)[:, None, :], embeds], axis=1)        # [B, T, E]
        gates_x = jnp.einsum('bte,eg->btg', x, w_ih, precision=hi) + self.b   # [B, T, 4H]

        def step(carry, gx_t):
            h, c = carry
            gates = gx_t + jnp.dot(q(h), w_hh, precision=hi)
            i = jax.nn.sigmoid(gates[:, 0 * H:1 * H])
            f = jax.nn.sigmoid(gates[:, 1 * H:2 * H])
            g = jnp.tanh(gates[:, 2 * H:3 * H])
            o = jax.nn.sigmoid(gates[:, 3 * H:4 * H])
            c = f * c + i * g
            h = o * jnp.tanh(c)
            return (h, c), h

        h0 = jnp.zeros((B, H), jnp.float32)
        c0 = jnp.zeros((B, H), jnp.float32)
        _, hs = jax.lax.scan(step, (h0, c0), jnp.transpose(gates_x, (1, 0, 2)))  # [T, B, H]
        logits = jnp.einsum('tbh,hv->btv', q(hs), w_out, precision=hi) + self.b_out
        return logits

    def forward_reference_matched(self, features, captions):
        """Matches the kernel's numerics (bf16-valued operands, f32 accumulation)."""
        return self._reference(features, captions, quantize=True)

    def forward_reference_fp32(self, features, captions):
        """Pure fp32 model (what the original PyTorch module computes)."""
        return self._reference(features, captions, quantize=False)


if __name__ == "__main__":
    key = jax.random.PRNGKey(0)
    k_model, k_feat, k_cap = jax.random.split(key, 3)

    embed_size, hidden_size, vocab_size = 32, 32, 128
    B, L = 2, 9   # sequence length T = 1 (features) + 8 (embedded caption tokens) = 9

    model = DecoderRNNPallas(embed_size, hidden_size, vocab_size, k_model)

    features = jax.random.normal(k_feat, (B, embed_size), jnp.float32)
    captions = jax.random.randint(k_cap, (B, L), 0, vocab_size, jnp.int32)

    out = jax.block_until_ready(model.forward(features, captions))
    assert out.shape == (B, L, vocab_size), out.shape

    # Tight check against a reference with identical (bf16-operand / f32-accum) numerics.
    ref_m = jax.block_until_ready(model.forward_reference_matched(features, captions))
    np.testing.assert_allclose(np.asarray(out), np.asarray(ref_m), rtol=2e-3, atol=2e-3)

    # Non-circular parity check against the pure fp32 model: deviation is bf16-cast level.
    ref_f = jax.block_until_ready(model.forward_reference_fp32(features, captions))
    max_diff = float(np.max(np.abs(np.asarray(out) - np.asarray(ref_f))))
    assert max_diff < 0.1, f"fp32 parity check failed: max abs diff {max_diff}"

    print("KERNEL_OK")
</pallas_src>

<mosaic_0001>
module attributes {stable_mosaic.version = 11 : i64} {
  func.func @_decoder_fused_kernel(%arg0: memref<2x9xi32, #tpu.memory_space<vmem>>, %arg1: memref<2x32xf32, #tpu.memory_space<vmem>>, %arg2: memref<128x32xbf16, #tpu.memory_space<vmem>>, %arg3: memref<32x128xbf16, #tpu.memory_space<vmem>>, %arg4: memref<32x128xbf16, #tpu.memory_space<vmem>>, %arg5: memref<1x128xf32, #tpu.memory_space<vmem>>, %arg6: memref<32x128xbf16, #tpu.memory_space<vmem>>, %arg7: memref<1x128xf32, #tpu.memory_space<vmem>>, %arg8: memref<2x9x128xf32, #tpu.memory_space<vmem>>) attributes {dimension_semantics = [], scalar_prefetch = 0 : i64, scratch_operands = 0 : i64, tpu.core_type = #tpu.core_type<tc>} {
    %c0 = arith.constant 0 : index
    %c0_0 = arith.constant 0 : index
    %0 = vector.load %arg3[%c0, %c0_0] : memref<32x128xbf16, #tpu.memory_space<vmem>>, vector<32x128xbf16>
    %c0_1 = arith.constant 0 : index
    %c0_2 = arith.constant 0 : index
    %1 = vector.load %arg4[%c0_1, %c0_2] : memref<32x128xbf16, #tpu.memory_space<vmem>>, vector<32x128xbf16>
    %c0_3 = arith.constant 0 : index
    %c0_4 = arith.constant 0 : index
    %2 = vector.load %arg5[%c0_3, %c0_4] : memref<1x128xf32, #tpu.memory_space<vmem>>, vector<1x128xf32>
    %c0_5 = arith.constant 0 : index
    %c0_6 = arith.constant 0 : index
    %3 = vector.load %arg6[%c0_5, %c0_6] : memref<32x128xbf16, #tpu.memory_space<vmem>>, vector<32x128xbf16>
    %c0_7 = arith.constant 0 : index
    %c0_8 = arith.constant 0 : index
    %4 = vector.load %arg7[%c0_7, %c0_8] : memref<1x128xf32, #tpu.memory_space<vmem>>, vector<1x128xf32>
    %c0_9 = arith.constant 0 : index
    %c0_10 = arith.constant 0 : index
    %5 = vector.load %arg0[%c0_9, %c0_10] : memref<2x9xi32, #tpu.memory_space<vmem>>, vector<2x9xi32>
    %6 = vector.extract_strided_slice %5 {offsets = [0, 0], sizes = [2, 8], strides = [1, 1]} : vector<2x9xi32> to vector<2x8xi32>
    %7 = tpu.iota {dimensions = array<i32: 2>} : vector<2x8x128xi32>
    %8 = vector.shape_cast %6 : vector<2x8xi32> to vector<2x8x1xi32>
    %9 = vector.broadcast %8 : vector<2x8x1xi32> to vector<2x8x128xi32>
    %10 = arith.cmpi eq, %9, %7 : vector<2x8x128xi32>
    %11 = arith.extui %10 : vector<2x8x128xi1> to vector<2x8x128xi32>
    %12 = arith.sitofp %11 : vector<2x8x128xi32> to vector<2x8x128xf32>
    %13 = arith.truncf %12 : vector<2x8x128xf32> to vector<2x8x128xbf16>
    %14 = vector.shape_cast %13 : vector<2x8x128xbf16> to vector<16x128xbf16>
    %c0_11 = arith.constant 0 : index
    %c0_12 = arith.constant 0 : index
    %15 = vector.load %arg2[%c0_11, %c0_12] : memref<128x32xbf16, #tpu.memory_space<vmem>>, vector<128x32xbf16>
    %cst = arith.constant dense<0.000000e+00> : vector<16x32xf32>
    %16 = tpu.matmul %14, %15, %cst {dimension_numbers = #tpu.dot_dimension_numbers<[1], [0], [0], [1], [0, 0, 1, 1], [], []>} : vector<16x128xbf16>, vector<128x32xbf16>, vector<16x32xf32> -> vector<16x32xf32>
    %17 = arith.truncf %16 : vector<16x32xf32> to vector<16x32xbf16>
    %c0_13 = arith.constant 0 : index
    %c0_14 = arith.constant 0 : index
    %18 = vector.load %arg1[%c0_13, %c0_14] : memref<2x32xf32, #tpu.memory_space<vmem>>, vector<2x32xf32>
    %19 = arith.truncf %18 : vector<2x32xf32> to vector<2x32xbf16>
    %cst_15 = arith.constant dense<0.000000e+00> : vector<2x128xf32>
    %20 = tpu.matmul %19, %0, %cst_15 {dimension_numbers = #tpu.dot_dimension_numbers<[1], [0], [0], [1], [0, 0, 1, 1], [], []>} : vector<2x32xbf16>, vector<32x128xbf16>, vector<2x128xf32> -> vector<2x128xf32>
    %21 = vector.broadcast %2 : vector<1x128xf32> to vector<2x128xf32>
    %22 = arith.addf %20, %21 : vector<2x128xf32>
    %cst_16 = arith.constant dense<0.000000e+00> : vector<16x128xf32>
    %23 = tpu.matmul %17, %0, %cst_16 {dimension_numbers = #tpu.dot_dimension_numbers<[1], [0], [0], [1], [0, 0, 1, 1], [], []>} : vector<16x32xbf16>, vector<32x128xbf16>, vector<16x128xf32> -> vector<16x128xf32>
    %24 = vector.broadcast %2 : vector<1x128xf32> to vector<16x128xf32>
    %25 = arith.addf %23, %24 : vector<16x128xf32>
    %26 = vector.shape_cast %25 : vector<16x128xf32> to vector<2x8x128xf32>
    %cst_17 = arith.constant 0.000000e+00 : f32
    %27 = vector.broadcast %cst_17 : f32 to vector<2x32xf32>
    %cst_18 = arith.constant 0.000000e+00 : f32
    %28 = vector.broadcast %cst_18 : f32 to vector<2x32xf32>
    %29 = arith.truncf %27 : vector<2x32xf32> to vector<2x32xbf16>
    %cst_19 = arith.constant dense<0.000000e+00> : vector<2x128xf32>
    %30 = tpu.matmul %29, %1, %cst_19 {dimension_numbers = #tpu.dot_dimension_numbers<[1], [0], [0], [1], [0, 0, 1, 1], [], []>} : vector<2x32xbf16>, vector<32x128xbf16>, vector<2x128xf32> -> vector<2x128xf32>
    %31 = arith.addf %22, %30 : vector<2x128xf32>
    %32 = vector.extract_strided_slice %31 {offsets = [0, 0], sizes = [2, 64], strides = [1, 1]} : vector<2x128xf32> to vector<2x64xf32>
    %33 = arith.negf %32 : vector<2x64xf32>
    %34 = math.exp %33 : vector<2x64xf32>
    %cst_20 = arith.constant 1.000000e+00 : f32
    %35 = vector.broadcast %cst_20 : f32 to vector<2x64xf32>
    %36 = arith.addf %35, %34 : vector<2x64xf32>
    %37 = arith.divf %35, %36 : vector<2x64xf32>
    %38 = vector.extract_strided_slice %37 {offsets = [0, 0], sizes = [2, 32], strides = [1, 1]} : vector<2x64xf32> to vector<2x32xf32>
    %39 = vector.extract_strided_slice %37 {offsets = [0, 32], sizes = [2, 32], strides = [1, 1]} : vector<2x64xf32> to vector<2x32xf32>
    %40 = vector.extract_strided_slice %31 {offsets = [0, 64], sizes = [2, 32], strides = [1, 1]} : vector<2x128xf32> to vector<2x32xf32>
    %41 = math.tanh %40 : vector<2x32xf32>
    %42 = vector.extract_strided_slice %31 {offsets = [0, 96], sizes = [2, 32], strides = [1, 1]} : vector<2x128xf32> to vector<2x32xf32>
    %43 = arith.negf %42 : vector<2x32xf32>
    %44 = math.exp %43 : vector<2x32xf32>
    %cst_21 = arith.constant 1.000000e+00 : f32
    %45 = vector.broadcast %cst_21 : f32 to vector<2x32xf32>
    %46 = arith.addf %45, %44 : vector<2x32xf32>
    %47 = arith.divf %45, %46 : vector<2x32xf32>
    %48 = arith.mulf %39, %28 : vector<2x32xf32>
    %49 = arith.mulf %38, %41 : vector<2x32xf32>
    %50 = arith.addf %48, %49 : vector<2x32xf32>
    %51 = math.tanh %50 : vector<2x32xf32>
    %52 = arith.mulf %47, %51 : vector<2x32xf32>
    %53 = vector.extract_strided_slice %26 {offsets = [0, 0, 0], sizes = [2, 1, 128], strides = [1, 1, 1]} : vector<2x8x128xf32> to vector<2x1x128xf32>
    %54 = vector.shape_cast %53 : vector<2x1x128xf32> to vector<2x128xf32>
    %55 = arith.truncf %52 : vector<2x32xf32> to vector<2x32xbf16>
    %cst_22 = arith.constant dense<0.000000e+00> : vector<2x128xf32>
    %56 = tpu.matmul %55, %1, %cst_22 {dimension_numbers = #tpu.dot_dimension_numbers<[1], [0], [0], [1], [0, 0, 1, 1], [], []>} : vector<2x32xbf16>, vector<32x128xbf16>, vector<2x128xf32> -> vector<2x128xf32>
    %57 = arith.addf %54, %56 : vector<2x128xf32>
    %58 = vector.extract_strided_slice %57 {offsets = [0, 0], sizes = [2, 64], strides = [1, 1]} : vector<2x128xf32> to vector<2x64xf32>
    %59 = arith.negf %58 : vector<2x64xf32>
    %60 = math.exp %59 : vector<2x64xf32>
    %cst_23 = arith.constant 1.000000e+00 : f32
    %61 = vector.broadcast %cst_23 : f32 to vector<2x64xf32>
    %62 = arith.addf %61, %60 : vector<2x64xf32>
    %63 = arith.divf %61, %62 : vector<2x64xf32>
    %64 = vector.extract_strided_slice %63 {offsets = [0, 0], sizes = [2, 32], strides = [1, 1]} : vector<2x64xf32> to vector<2x32xf32>
    %65 = vector.extract_strided_slice %63 {offsets = [0, 32], sizes = [2, 32], strides = [1, 1]} : vector<2x64xf32> to vector<2x32xf32>
    %66 = vector.extract_strided_slice %57 {offsets = [0, 64], sizes = [2, 32], strides = [1, 1]} : vector<2x128xf32> to vector<2x32xf32>
    %67 = math.tanh %66 : vector<2x32xf32>
    %68 = vector.extract_strided_slice %57 {offsets = [0, 96], sizes = [2, 32], strides = [1, 1]} : vector<2x128xf32> to vector<2x32xf32>
    %69 = arith.negf %68 : vector<2x32xf32>
    %70 = math.exp %69 : vector<2x32xf32>
    %cst_24 = arith.constant 1.000000e+00 : f32
    %71 = vector.broadcast %cst_24 : f32 to vector<2x32xf32>
    %72 = arith.addf %71, %70 : vector<2x32xf32>
    %73 = arith.divf %71, %72 : vector<2x32xf32>
    %74 = arith.mulf %65, %50 : vector<2x32xf32>
    %75 = arith.mulf %64, %67 : vector<2x32xf32>
    %76 = arith.addf %74, %75 : vector<2x32xf32>
    %77 = math.tanh %76 : vector<2x32xf32>
    %78 = arith.mulf %73, %77 : vector<2x32xf32>
    %79 = vector.extract_strided_slice %26 {offsets = [0, 1, 0], sizes = [2, 1, 128], strides = [1, 1, 1]} : vector<2x8x128xf32> to vector<2x1x128xf32>
    %80 = vector.shape_cast %79 : vector<2x1x128xf32> to vector<2x128xf32>
    %81 = arith.truncf %78 : vector<2x32xf32> to vector<2x32xbf16>
    %cst_25 = arith.constant dense<0.000000e+00> : vector<2x128xf32>
    %82 = tpu.matmul %81, %1, %cst_25 {dimension_numbers = #tpu.dot_dimension_numbers<[1], [0], [0], [1], [0, 0, 1, 1], [], []>} : vector<2x32xbf16>, vector<32x128xbf16>, vector<2x128xf32> -> vector<2x128xf32>
    %83 = arith.addf %80, %82 : vector<2x128xf32>
    %84 = vector.extract_strided_slice %83 {offsets = [0, 0], sizes = [2, 64], strides = [1, 1]} : vector<2x128xf32> to vector<2x64xf32>
    %85 = arith.negf %84 : vector<2x64xf32>
    %86 = math.exp %85 : vector<2x64xf32>
    %cst_26 = arith.constant 1.000000e+00 : f32
    %87 = vector.broadcast %cst_26 : f32 to vector<2x64xf32>
    %88 = arith.addf %87, %86 : vector<2x64xf32>
    %89 = arith.divf %87, %88 : vector<2x64xf32>
    %90 = vector.extract_strided_slice %89 {offsets = [0, 0], sizes = [2, 32], strides = [1, 1]} : vector<2x64xf32> to vector<2x32xf32>
    %91 = vector.extract_strided_slice %89 {offsets = [0, 32], sizes = [2, 32], strides = [1, 1]} : vector<2x64xf32> to vector<2x32xf32>
    %92 = vector.extract_strided_slice %83 {offsets = [0, 64], sizes = [2, 32], strides = [1, 1]} : vector<2x128xf32> to vector<2x32xf32>
    %93 = math.tanh %92 : vector<2x32xf32>
    %94 = vector.extract_strided_slice %83 {offsets = [0, 96], sizes = [2, 32], strides = [1, 1]} : vector<2x128xf32> to vector<2x32xf32>
    %95 = arith.negf %94 : vector<2x32xf32>
    %96 = math.exp %95 : vector<2x32xf32>
    %cst_27 = arith.constant 1.000000e+00 : f32
    %97 = vector.broadcast %cst_27 : f32 to vector<2x32xf32>
    %98 = arith.addf %97, %96 : vector<2x32xf32>
    %99 = arith.divf %97, %98 : vector<2x32xf32>
    %100 = arith.mulf %91, %76 : vector<2x32xf32>
    %101 = arith.mulf %90, %93 : vector<2x32xf32>
    %102 = arith.addf %100, %101 : vector<2x32xf32>
    %103 = math.tanh %102 : vector<2x32xf32>
    %104 = arith.mulf %99, %103 : vector<2x32xf32>
    %105 = vector.extract_strided_slice %26 {offsets = [0, 2, 0], sizes = [2, 1, 128], strides = [1, 1, 1]} : vector<2x8x128xf32> to vector<2x1x128xf32>
    %106 = vector.shape_cast %105 : vector<2x1x128xf32> to vector<2x128xf32>
    %107 = arith.truncf %104 : vector<2x32xf32> to vector<2x32xbf16>
    %cst_28 = arith.constant dense<0.000000e+00> : vector<2x128xf32>
    %108 = tpu.matmul %107, %1, %cst_28 {dimension_numbers = #tpu.dot_dimension_numbers<[1], [0], [0], [1], [0, 0, 1, 1], [], []>} : vector<2x32xbf16>, vector<32x128xbf16>, vector<2x128xf32> -> vector<2x128xf32>
    %109 = arith.addf %106, %108 : vector<2x128xf32>
    %110 = vector.extract_strided_slice %109 {offsets = [0, 0], sizes = [2, 64], strides = [1, 1]} : vector<2x128xf32> to vector<2x64xf32>
    %111 = arith.negf %110 : vector<2x64xf32>
    %112 = math.exp %111 : vector<2x64xf32>
    %cst_29 = arith.constant 1.000000e+00 : f32
    %113 = vector.broadcast %cst_29 : f32 to vector<2x64xf32>
    %114 = arith.addf %113, %112 : vector<2x64xf32>
    %115 = arith.divf %113, %114 : vector<2x64xf32>
    %116 = vector.extract_strided_slice %115 {offsets = [0, 0], sizes = [2, 32], strides = [1, 1]} : vector<2x64xf32> to vector<2x32xf32>
    %117 = vector.extract_strided_slice %115 {offsets = [0, 32], sizes = [2, 32], strides = [1, 1]} : vector<2x64xf32> to vector<2x32xf32>
    %118 = vector.extract_strided_slice %109 {offsets = [0, 64], sizes = [2, 32], strides = [1, 1]} : vector<2x128xf32> to vector<2x32xf32>
    %119 = math.tanh %118 : vector<2x32xf32>
    %120 = vector.extract_strided_slice %109 {offsets = [0, 96], sizes = [2, 32], strides = [1, 1]} : vector<2x128xf32> to vector<2x32xf32>
    %121 = arith.negf %120 : vector<2x32xf32>
    %122 = math.exp %121 : vector<2x32xf32>
    %cst_30 = arith.constant 1.000000e+00 : f32
    %123 = vector.broadcast %cst_30 : f32 to vector<2x32xf32>
    %124 = arith.addf %123, %122 : vector<2x32xf32>
    %125 = arith.divf %123, %124 : vector<2x32xf32>
    %126 = arith.mulf %117, %102 : vector<2x32xf32>
    %127 = arith.mulf %116, %119 : vector<2x32xf32>
    %128 = arith.addf %126, %127 : vector<2x32xf32>
    %129 = math.tanh %128 : vector<2x32xf32>
    %130 = arith.mulf %125, %129 : vector<2x32xf32>
    %131 = vector.extract_strided_slice %26 {offsets = [0, 3, 0], sizes = [2, 1, 128], strides = [1, 1, 1]} : vector<2x8x128xf32> to vector<2x1x128xf32>
    %132 = vector.shape_cast %131 : vector<2x1x128xf32> to vector<2x128xf32>
    %133 = arith.truncf %130 : vector<2x32xf32> to vector<2x32xbf16>
    %cst_31 = arith.constant dense<0.000000e+00> : vector<2x128xf32>
    %134 = tpu.matmul %133, %1, %cst_31 {dimension_numbers = #tpu.dot_dimension_numbers<[1], [0], [0], [1], [0, 0, 1, 1], [], []>} : vector<2x32xbf16>, vector<32x128xbf16>, vector<2x128xf32> -> vector<2x128xf32>
    %135 = arith.addf %132, %134 : vector<2x128xf32>
    %136 = vector.extract_strided_slice %135 {offsets = [0, 0], sizes = [2, 64], strides = [1, 1]} : vector<2x128xf32> to vector<2x64xf32>
    %137 = arith.negf %136 : vector<2x64xf32>
    %138 = math.exp %137 : vector<2x64xf32>
    %cst_32 = arith.constant 1.000000e+00 : f32
    %139 = vector.broadcast %cst_32 : f32 to vector<2x64xf32>
    %140 = arith.addf %139, %138 : vector<2x64xf32>
    %141 = arith.divf %139, %140 : vector<2x64xf32>
    %142 = vector.extract_strided_slice %141 {offsets = [0, 0], sizes = [2, 32], strides = [1, 1]} : vector<2x64xf32> to vector<2x32xf32>
    %143 = vector.extract_strided_slice %141 {offsets = [0, 32], sizes = [2, 32], strides = [1, 1]} : vector<2x64xf32> to vector<2x32xf32>
    %144 = vector.extract_strided_slice %135 {offsets = [0, 64], sizes = [2, 32], strides = [1, 1]} : vector<2x128xf32> to vector<2x32xf32>
    %145 = math.tanh %144 : vector<2x32xf32>
    %146 = vector.extract_strided_slice %135 {offsets = [0, 96], sizes = [2, 32], strides = [1, 1]} : vector<2x128xf32> to vector<2x32xf32>
    %147 = arith.negf %146 : vector<2x32xf32>
    %148 = math.exp %147 : vector<2x32xf32>
    %cst_33 = arith.constant 1.000000e+00 : f32
    %149 = vector.broadcast %cst_33 : f32 to vector<2x32xf32>
    %150 = arith.addf %149, %148 : vector<2x32xf32>
    %151 = arith.divf %149, %150 : vector<2x32xf32>
    %152 = arith.mulf %143, %128 : vector<2x32xf32>
    %153 = arith.mulf %142, %145 : vector<2x32xf32>
    %154 = arith.addf %152, %153 : vector<2x32xf32>
    %155 = math.tanh %154 : vector<2x32xf32>
    %156 = arith.mulf %151, %155 : vector<2x32xf32>
    %157 = vector.extract_strided_slice %26 {offsets = [0, 4, 0], sizes = [2, 1, 128], strides = [1, 1, 1]} : vector<2x8x128xf32> to vector<2x1x128xf32>
    %158 = vector.shape_cast %157 : vector<2x1x128xf32> to vector<2x128xf32>
    %159 = arith.truncf %156 : vector<2x32xf32> to vector<2x32xbf16>
    %cst_34 = arith.constant dense<0.000000e+00> : vector<2x128xf32>
    %160 = tpu.matmul %159, %1, %cst_34 {dimension_numbers = #tpu.dot_dimension_numbers<[1], [0], [0], [1], [0, 0, 1, 1], [], []>} : vector<2x32xbf16>, vector<32x128xbf16>, vector<2x128xf32> -> vector<2x128xf32>
    %161 = arith.addf %158, %160 : vector<2x128xf32>
    %162 = vector.extract_strided_slice %161 {offsets = [0, 0], sizes = [2, 64], strides = [1, 1]} : vector<2x128xf32> to vector<2x64xf32>
    %163 = arith.negf %162 : vector<2x64xf32>
    %164 = math.exp %163 : vector<2x64xf32>
    %cst_35 = arith.constant 1.000000e+00 : f32
    %165 = vector.broadcast %cst_35 : f32 to vector<2x64xf32>
    %166 = arith.addf %165, %164 : vector<2x64xf32>
    %167 = arith.divf %165, %166 : vector<2x64xf32>
    %168 = vector.extract_strided_slice %167 {offsets = [0, 0], sizes = [2, 32], strides = [1, 1]} : vector<2x64xf32> to vector<2x32xf32>
    %169 = vector.extract_strided_slice %167 {offsets = [0, 32], sizes = [2, 32], strides = [1, 1]} : vector<2x64xf32> to vector<2x32xf32>
    %170 = vector.extract_strided_slice %161 {offsets = [0, 64], sizes = [2, 32], strides = [1, 1]} : vector<2x128xf32> to vector<2x32xf32>
    %171 = math.tanh %170 : vector<2x32xf32>
    %172 = vector.extract_strided_slice %161 {offsets = [0, 96], sizes = [2, 32], strides = [1, 1]} : vector<2x128xf32> to vector<2x32xf32>
    %173 = arith.negf %172 : vector<2x32xf32>
    %174 = math.exp %173 : vector<2x32xf32>
    %cst_36 = arith.constant 1.000000e+00 : f32
    %175 = vector.broadcast %cst_36 : f32 to vector<2x32xf32>
    %176 = arith.addf %175, %174 : vector<2x32xf32>
    %177 = arith.divf %175, %176 : vector<2x32xf32>
    %178 = arith.mulf %169, %154 : vector<2x32xf32>
    %179 = arith.mulf %168, %171 : vector<2x32xf32>
    %180 = arith.addf %178, %179 : vector<2x32xf32>
    %181 = math.tanh %180 : vector<2x32xf32>
    %182 = arith.mulf %177, %181 : vector<2x32xf32>
    %183 = vector.extract_strided_slice %26 {offsets = [0, 5, 0], sizes = [2, 1, 128], strides = [1, 1, 1]} : vector<2x8x128xf32> to vector<2x1x128xf32>
    %184 = vector.shape_cast %183 : vector<2x1x128xf32> to vector<2x128xf32>
    %185 = arith.truncf %182 : vector<2x32xf32> to vector<2x32xbf16>
    %cst_37 = arith.constant dense<0.000000e+00> : vector<2x128xf32>
    %186 = tpu.matmul %185, %1, %cst_37 {dimension_numbers = #tpu.dot_dimension_numbers<[1], [0], [0], [1], [0, 0, 1, 1], [], []>} : vector<2x32xbf16>, vector<32x128xbf16>, vector<2x128xf32> -> vector<2x128xf32>
    %187 = arith.addf %184, %186 : vector<2x128xf32>
    %188 = vector.extract_strided_slice %187 {offsets = [0, 0], sizes = [2, 64], strides = [1, 1]} : vector<2x128xf32> to vector<2x64xf32>
    %189 = arith.negf %188 : vector<2x64xf32>
    %190 = math.exp %189 : vector<2x64xf32>
    %cst_38 = arith.constant 1.000000e+00 : f32
    %191 = vector.broadcast %cst_38 : f32 to vector<2x64xf32>
    %192 = arith.addf %191, %190 : vector<2x64xf32>
    %193 = arith.divf %191, %192 : vector<2x64xf32>
    %194 = vector.extract_strided_slice %193 {offsets = [0, 0], sizes = [2, 32], strides = [1, 1]} : vector<2x64xf32> to vector<2x32xf32>
    %195 = vector.extract_strided_slice %193 {offsets = [0, 32], sizes = [2, 32], strides = [1, 1]} : vector<2x64xf32> to vector<2x32xf32>
    %196 = vector.extract_strided_slice %187 {offsets = [0, 64], sizes = [2, 32], strides = [1, 1]} : vector<2x128xf32> to vector<2x32xf32>
    %197 = math.tanh %196 : vector<2x32xf32>
    %198 = vector.extract_strided_slice %187 {offsets = [0, 96], sizes = [2, 32], strides = [1, 1]} : vector<2x128xf32> to vector<2x32xf32>
    %199 = arith.negf %198 : vector<2x32xf32>
    %200 = math.exp %199 : vector<2x32xf32>
    %cst_39 = arith.constant 1.000000e+00 : f32
    %201 = vector.broadcast %cst_39 : f32 to vector<2x32xf32>
    %202 = arith.addf %201, %200 : vector<2x32xf32>
    %203 = arith.divf %201, %202 : vector<2x32xf32>
    %204 = arith.mulf %195, %180 : vector<2x32xf32>
    %205 = arith.mulf %194, %197 : vector<2x32xf32>
    %206 = arith.addf %204, %205 : vector<2x32xf32>
    %207 = math.tanh %206 : vector<2x32xf32>
    %208 = arith.mulf %203, %207 : vector<2x32xf32>
    %209 = vector.extract_strided_slice %26 {offsets = [0, 6, 0], sizes = [2, 1, 128], strides = [1, 1, 1]} : vector<2x8x128xf32> to vector<2x1x128xf32>
    %210 = vector.shape_cast %209 : vector<2x1x128xf32> to vector<2x128xf32>
    %211 = arith.truncf %208 : vector<2x32xf32> to vector<2x32xbf16>
    %cst_40 = arith.constant dense<0.000000e+00> : vector<2x128xf32>
    %212 = tpu.matmul %211, %1, %cst_40 {dimension_numbers = #tpu.dot_dimension_numbers<[1], [0], [0], [1], [0, 0, 1, 1], [], []>} : vector<2x32xbf16>, vector<32x128xbf16>, vector<2x128xf32> -> vector<2x128xf32>
    %213 = arith.addf %210, %212 : vector<2x128xf32>
    %214 = vector.extract_strided_slice %213 {offsets = [0, 0], sizes = [2, 64], strides = [1, 1]} : vector<2x128xf32> to vector<2x64xf32>
    %215 = arith.negf %214 : vector<2x64xf32>
    %216 = math.exp %215 : vector<2x64xf32>
    %cst_41 = arith.constant 1.000000e+00 : f32
    %217 = vector.broadcast %cst_41 : f32 to vector<2x64xf32>
    %218 = arith.addf %217, %216 : vector<2x64xf32>
    %219 = arith.divf %217, %218 : vector<2x64xf32>
    %220 = vector.extract_strided_slice %219 {offsets = [0, 0], sizes = [2, 32], strides = [1, 1]} : vector<2x64xf32> to vector<2x32xf32>
    %221 = vector.extract_strided_slice %219 {offsets = [0, 32], sizes = [2, 32], strides = [1, 1]} : vector<2x64xf32> to vector<2x32xf32>
    %222 = vector.extract_strided_slice %213 {offsets = [0, 64], sizes = [2, 32], strides = [1, 1]} : vector<2x128xf32> to vector<2x32xf32>
    %223 = math.tanh %222 : vector<2x32xf32>
    %224 = vector.extract_strided_slice %213 {offsets = [0, 96], sizes = [2, 32], strides = [1, 1]} : vector<2x128xf32> to vector<2x32xf32>
    %225 = arith.negf %224 : vector<2x32xf32>
    %226 = math.exp %225 : vector<2x32xf32>
    %cst_42 = arith.constant 1.000000e+00 : f32
    %227 = vector.broadcast %cst_42 : f32 to vector<2x32xf32>
    %228 = arith.addf %227, %226 : vector<2x32xf32>
    %229 = arith.divf %227, %228 : vector<2x32xf32>
    %230 = arith.mulf %221, %206 : vector<2x32xf32>
    %231 = arith.mulf %220, %223 : vector<2x32xf32>
    %232 = arith.addf %230, %231 : vector<2x32xf32>
    %233 = math.tanh %232 : vector<2x32xf32>
    %234 = arith.mulf %229, %233 : vector<2x32xf32>
    %235 = vector.extract_strided_slice %26 {offsets = [0, 7, 0], sizes = [2, 1, 128], strides = [1, 1, 1]} : vector<2x8x128xf32> to vector<2x1x128xf32>
    %236 = vector.shape_cast %235 : vector<2x1x128xf32> to vector<2x128xf32>
    %237 = arith.truncf %234 : vector<2x32xf32> to vector<2x32xbf16>
    %cst_43 = arith.constant dense<0.000000e+00> : vector<2x128xf32>
    %238 = tpu.matmul %237, %1, %cst_43 {dimension_numbers = #tpu.dot_dimension_numbers<[1], [0], [0], [1], [0, 0, 1, 1], [], []>} : vector<2x32xbf16>, vector<32x128xbf16>, vector<2x128xf32> -> vector<2x128xf32>
    %239 = arith.addf %236, %238 : vector<2x128xf32>
    %240 = vector.extract_strided_slice %239 {offsets = [0, 0], sizes = [2, 64], strides = [1, 1]} : vector<2x128xf32> to vector<2x64xf32>
    %241 = arith.negf %240 : vector<2x64xf32>
    %242 = math.exp %241 : vector<2x64xf32>
    %cst_44 = arith.constant 1.000000e+00 : f32
    %243 = vector.broadcast %cst_44 : f32 to vector<2x64xf32>
    %244 = arith.addf %243, %242 : vector<2x64xf32>
    %245 = arith.divf %243, %244 : vector<2x64xf32>
    %246 = vector.extract_strided_slice %245 {offsets = [0, 0], sizes = [2, 32], strides = [1, 1]} : vector<2x64xf32> to vector<2x32xf32>
    %247 = vector.extract_strided_slice %245 {offsets = [0, 32], sizes = [2, 32], strides = [1, 1]} : vector<2x64xf32> to vector<2x32xf32>
    %248 = vector.extract_strided_slice %239 {offsets = [0, 64], sizes = [2, 32], strides = [1, 1]} : vector<2x128xf32> to vector<2x32xf32>
    %249 = math.tanh %248 : vector<2x32xf32>
    %250 = vector.extract_strided_slice %239 {offsets = [0, 96], sizes = [2, 32], strides = [1, 1]} : vector<2x128xf32> to vector<2x32xf32>
    %251 = arith.negf %250 : vector<2x32xf32>
    %252 = math.exp %251 : vector<2x32xf32>
    %cst_45 = arith.constant 1.000000e+00 : f32
    %253 = vector.broadcast %cst_45 : f32 to vector<2x32xf32>
    %254 = arith.addf %253, %252 : vector<2x32xf32>
    %255 = arith.divf %253, %254 : vector<2x32xf32>
    %256 = arith.mulf %247, %232 : vector<2x32xf32>
    %257 = arith.mulf %246, %249 : vector<2x32xf32>
    %258 = arith.addf %256, %257 : vector<2x32xf32>
    %259 = math.tanh %258 : vector<2x32xf32>
    %260 = arith.mulf %255, %259 : vector<2x32xf32>
    %261 = vector.shape_cast %52 : vector<2x32xf32> to vector<2x1x32xf32>
    %262 = vector.shape_cast %78 : vector<2x32xf32> to vector<2x1x32xf32>
    %263 = vector.shape_cast %104 : vector<2x32xf32> to vector<2x1x32xf32>
    %264 = vector.shape_cast %130 : vector<2x32xf32> to vector<2x1x32xf32>
    %265 = vector.shape_cast %156 : vector<2x32xf32> to vector<2x1x32xf32>
    %266 = vector.shape_cast %182 : vector<2x32xf32> to vector<2x1x32xf32>
    %267 = vector.shape_cast %208 : vector<2x32xf32> to vector<2x1x32xf32>
    %268 = vector.shape_cast %234 : vector<2x32xf32> to vector<2x1x32xf32>
    %269 = vector.shape_cast %260 : vector<2x32xf32> to vector<2x1x32xf32>
    %270 = tpu.concatenate %261, %262, %263, %264, %265, %266, %267, %268, %269 in 1 : vector<2x1x32xf32>, vector<2x1x32xf32>, vector<2x1x32xf32>, vector<2x1x32xf32>, vector<2x1x32xf32>, vector<2x1x32xf32>, vector<2x1x32xf32>, vector<2x1x32xf32>, vector<2x1x32xf32> -> vector<2x9x32xf32>
    %271 = vector.shape_cast %270 : vector<2x9x32xf32> to vector<18x32xf32>
    %272 = arith.truncf %271 : vector<18x32xf32> to vector<18x32xbf16>
    %cst_46 = arith.constant dense<0.000000e+00> : vector<18x128xf32>
    %273 = tpu.matmul %272, %3, %cst_46 {dimension_numbers = #tpu.dot_dimension_numbers<[1], [0], [0], [1], [0, 0, 1, 1], [], []>} : vector<18x32xbf16>, vector<32x128xbf16>, vector<18x128xf32> -> vector<18x128xf32>
    %274 = vector.broadcast %4 : vector<1x128xf32> to vector<18x128xf32>
    %275 = arith.addf %273, %274 : vector<18x128xf32>
    %276 = vector.shape_cast %275 : vector<18x128xf32> to vector<2x9x128xf32>
    %c0_47 = arith.constant 0 : index
    %c0_48 = arith.constant 0 : index
    %c0_49 = arith.constant 0 : index
    %277 = vector.load %arg8[%c0_47, %c0_48, %c0_49] : memref<2x9x128xf32, #tpu.memory_space<vmem>>, vector<2x9x128xf32>
    tpu.vector_store %arg8[%c0_47, %c0_48, %c0_49], %276 {strides = array<i32>} : memref<2x9x128xf32, #tpu.memory_space<vmem>>, vector<2x9x128xf32>,
    return
  }
}

</mosaic_0001>

<bundles_post_ra>
// kernel: tpu_custom_call.1
= control target key start
LH: loop header
LB: loop body
LE: loop exit
PB: predicated region body
PF: predicated region fallthrough
CT: control target
= control target key end

     0   :  { %v45_v0 = vlaneseq  ;;  %v1645_v15 = vmov 0.0   ;;  %vm171_vm2 = vcmask 261120   ;;  %v1646_v33 = vmov 0   ;;  %s2004_s2 = inlined_call_operand.vmem [shape: bf16[128,32], index: 2, kind: input, shape index: {}]   ;;  %s2005_s0 = inlined_call_operand.vmem [shape: s32[2,9], index: 0, kind: input, shape index: {}]   ;;  %s2006_s5 = inlined_call_operand.vmem [shape: f32[1,128], index: 5, kind: input, shape index: {}]   ;;  %s2007_s3 = inlined_call_operand.vmem [shape: bf16[32,128], index: 3, kind: input, shape index: {}]   ;;  %s2008_s4 = inlined_call_operand.vmem [shape: bf16[32,128], index: 4, kind: input, shape index: {}]   ;;  %s2009_s1 = inlined_call_operand.vmem [shape: f32[2,32], index: 1, kind: input, shape index: {}]   ;;  %s2010_s7 = inlined_call_operand.vmem [shape: f32[1,128], index: 7, kind: input, shape index: {}]   ;;  %s2011_s6 = inlined_call_operand.vmem [shape: bf16[32,128], index: 6, kind: input, shape index: {}]   ;;  %s2012_s8 = inlined_call_operand.vmem [shape: f32[2,9,128], index: 8, kind: output, shape index: {}]  }
   0x1   :  { %v1501_v1 = vld [vmem:[%s2004_s2 + $0x38] sm:$0xff]  ;;  %v1500_v3 = vld [vmem:[%s2004_s2 + $0x30] sm:$0xff]  ;;  %v44_v4 = vld [vmem:[%s2005_s0] sm:$0x3]  ;;  %vm382_vm15 = vcmask 1041409  }
   0x2   :  { %v49_v2 = vshrl.u32 %v45_v0, 7  ;;  %139 = vmatpush.bf16.msra.mxu0 %v1501_v1  ;;  %v1499_v5 = vld [vmem:[%s2004_s2 + $0x28] sm:$0xff]  ;;  %v47_v6 = vperm.slane %v44_v4, 0  ;;  %v1498_v7 = vld [vmem:[%s2004_s2 + $0x20] sm:$0xff]  ;;  %v54_v8 = vperm.slane %v44_v4, 1  ;;  %v1497_v9 = vld [vmem:[%s2004_s2 + $0x18] sm:$0xff] }
   0x3   :  { %v1496_v10 = vld [vmem:[%s2004_s2 + $0x10] sm:$0xff]  ;;  %v1495_v11 = vld [vmem:[%s2004_s2 + $0x8] sm:$0xff]  ;;  %v1494_v12 = vld [vmem:[%s2004_s2] sm:$0xff]  ;;  %v46_v13 = vand.u32 127, %v45_v0 }
   0x4   :  { %1506 = vset.pattern.permute.xlu0 %v49_v2  ;;  %v1489_v24 = vld [vmem:[%s2007_s3 + $0x8] sm:$0xff]  ;;  %v1488_v25 = vld [vmem:[%s2007_s3] sm:$0xff] }
   0x5   :  { %197 = vmatpush.bf16.msra.mxu3 %v1489_v24  ;;  %181 = vmatpush.bf16.msra.mxu1 %v1489_v24  ;;  %v1730_v26 = vld [vmem:[%s2008_s4 + $0x8] sm:$0xff]  ;;  %v154_v27 = vld [vmem:[%s2009_s1] sm:$0x3] }
   0x6   :  { %140 = vmatpush.bf16.msra.mxu0 %v1500_v3  ;;  %v155_v28 = vpack.c.bf16 %v154_v27, %v154_v27  ;;  %v1739_v29 = vld [vmem:[%s2008_s4] sm:$0xff]  ;;  %396 = vmatpush.bf16.msra.mxu2 %v1730_v26  ;;  %s1647_s4 = smov 64  }
   0x7   :  { %v1507_v36 = vld [vmem:[%s2006_s5] ss:$0 sm:$0xff]  ;;  %s1648_s5 = smov 32  }
   0x9   :  { %198 = vmatpush.bf16.msra.mxu3 %v1488_v25  ;;  %182 = vmatpush.bf16.msra.mxu1 %v1488_v25 }
   0xa   :  { %141 = vmatpush.bf16.msra.mxu0 %v1499_v5  ;;  %397 = vmatpush.bf16.msra.mxu2 %v1739_v29 }
   0xc   :  { %52 = vperm.xlu0 %1506, %v47_v6   ;;  %1443 = vmatmul.msk.bf16.vlgmr.msra.gmra.mxu1 %vm171_vm2, %v155_v28 }
   0xd   :  { %226 = vmatpush.bf16.msrb.mxu3 %v1730_v26  ;;  %284 = vmatpush.bf16.msrb.mxu1 %v1730_v26 }
   0xe   :  { %142 = vmatpush.bf16.msra.mxu0 %v1498_v7  ;;  %739 = vmatpush.bf16.msrb.mxu2 %v1730_v26 }
  0x11   :  { %227 = vmatpush.bf16.msrb.mxu3 %v1739_v29  ;;  %285 = vmatpush.bf16.msrb.mxu1 %v1739_v29 }
  0x12   :  { %143 = vmatpush.bf16.msra.mxu0 %v1497_v9  ;;  %740 = vmatpush.bf16.msrb.mxu2 %v1739_v29 }
  0x14   :  { %59 = vperm.xlu0 %1506, %v54_v8  }
  0x15   :  { %624 = vmatpush.bf16.msra.mxu1 %v1730_v26 }
  0x16   :  { %144 = vmatpush.bf16.msra.mxu0 %v1496_v10 }
  0x19   :  { %625 = vmatpush.bf16.msra.mxu1 %v1739_v29 }
  0x1a   :  { %145 = vmatpush.bf16.msra.mxu0 %v1495_v11 }
  0x1e   :  { %146 = vmatpush.bf16.msra.mxu0 %v1494_v12 }
  0x22   :  { %969 = vmatpush.bf16.msrb.mxu0 %v1730_v26 }
  0x26   :  { %970 = vmatpush.bf16.msrb.mxu0 %v1739_v29 }
  0x7e   :  { %v53_v14 = vpop.permute.xlu0 %52 }
  0x7f   :  { %vm61_vm0 = vcmp.eq.s32.totalorder %v53_v14, %v46_v13 }
  0x80   :  { %v1401_v16 = vsel %vm61_vm0, 1.0, %v1645_v15 }
  0x81   :  { %v67_v18 = vpack.c.bf16 %v1401_v16, %v1401_v16 }
  0x83   :  { %v87_v21 = vunpack.c.l.b16 %v67_v18 }
  0x86   :  { %v60_v17 = vpop.permute.xlu0 %59 }
  0x87   :  { %vm62_vm1 = vcmp.eq.s32.totalorder %v60_v17, %v46_v13 }
  0x88   :  { %v1402_v19 = vsel %vm62_vm1, 1.0, %v1645_v15 }
  0x89   :  { %v68_v20 = vpack.c.bf16 %v1402_v19, %v1402_v19  ;;  %v184_v34 = vpop.f32.mrf.mxu1 }
  0x8a   :  { %v185_v41 = vadd.f32 %v1507_v36, %v184_v34 }
  0x8b   :  { %v88_v22 = vunpack.c.l.b16 %v68_v20 }
  0x8d   :  { %v89_v23 = vpack.c.b16 %v88_v22, %v87_v21 }
  0x8f   :  { %147 = vmatmul.bf16.vlgmr.msra.gmra.mxu0 %v89_v23 }
  0x91   :  { %v186_v35 = vpop.f32.mrf.mxu1 }
 0x10c   :  { %v148_v30 = vpop.f32.mrf.mxu0 }
 0x114   :  { %v150_v31 = vpop.f32.mrf.mxu0 }
 0x115   :  { %v153_v32 = vpack.c.bf16 %v150_v31, %v148_v30 }
 0x117   :  { %1444 = vmatmul.msk.bf16.vlgmr.msra.gmra.mxu3 %vm171_vm2, %v153_v32 }
 0x118   :  { %509 = vmatpush.bf16.msra.mxu3 %v1730_v26 }
 0x11c   :  { %510 = vmatpush.bf16.msra.mxu3 %v1739_v29 }
 0x127   :  { %228 = vmatmul.bf16.vlgmr.msrb.gmra.mxu3 %v1646_v33 }
 0x128   :  { %854 = vmatpush.bf16.msrb.mxu3 %v1730_v26 }
 0x12c   :  { %855 = vmatpush.bf16.msrb.mxu3 %v1739_v29 }
 0x19a   :  { %v200_v37 = vpop.f32.mrf.mxu3 }
 0x19b   :  { %v1761_v38 = vadd.f32 %v1507_v36, %v200_v37 }
 0x1a2   :  { %v202_v39 = vpop.f32.mrf.mxu3 }
 0x1a3   :  { %v1763_v40 = vadd.f32 %v1507_v36, %v202_v39 }
 0x1aa   :  { %v229_v42 = vpop.f32.mrf.mxu3 }
 0x1ab   :  { %v233_v43 = vadd.f32 %v229_v42, %v185_v41 }
 0x1ad   :  { %1509 = vtanh.f32 %v233_v43  ;;  %v1453_v46 = vmul.f32 -1.442695, %v233_v43 }
 0x1af   :  { %1511 = vpow2.f32 %v1453_v46 }
 0x1b2   :  { %v231_v44 = vpop.f32.mrf.mxu3 }
 0x1b3   :  { %v1510_v45 = vpop.eup %1509 }
 0x1b4   :  { %256 = vrot.lane.b32.xlu1 %v1510_v45, %s1647_s4 }
 0x1b5   :  { %v1512_v47 = vpop.eup %1511 }
 0x1b6   :  { %v237_v48 = vadd.f32 1.0, %v1512_v47 }
 0x1b8   :  { %1513 = vrcp.f32 %v237_v48  ;;  %v249_v54 = vand.u32 2147483648, %v237_v48  ;;  %vm243_vm4 = vweird.f32 %v237_v48  ;;  %v247_v55 = vand.u32 2147483647, %v237_v48 }
 0x1ba   :  { %v250_v57 = vor.u32 1.1754944e-38, %v249_v54  ;;  %vm248_vm6 = vcmp.eq.f32.partialorder %v247_v55, 8.507059e+37 }
 0x1be   :  { %v1514_v49 = vpop.eup %1513 }
 0x1bf   :  { %v239_v50 = vmul.f32 %v1514_v49, %v237_v48  ;;  %vm244_vm3 = vweird.f32 %v1514_v49 }
 0x1c0   :  { %vm245_vm5 = vmor %vm243_vm4, %vm244_vm3 }
 0x1c1   :  { %v240_v51 = vsub.f32 1.0, %v239_v50 }
 0x1c3   :  { %v241_v52 = vmul.f32 %v1514_v49, %v240_v51 }
 0x1c5   :  { %v242_v53 = vadd.f32 %v1514_v49, %v241_v52 }
 0x1c7   :  { %v246_v56 = vsel %vm245_vm5, %v1514_v49, %v242_v53 }
 0x1c8   :  { %v251_v59 = vsel %vm248_vm6, %v250_v57, %v246_v56 }
 0x1c9   :  { %v254_v61 = vmul.f32 0.0, %v251_v59 }
 0x226   :  { %v257_v58 = vpop.permute.xlu1 %256 }
 0x227   :  { %v259_v60 = vmul.f32 %v257_v58, %v251_v59 }
 0x229   :  { %261 = vrot.lane.b32.xlu1 %v259_v60, %s1648_s5 }
 0x29b   :  { %v262_v62 = vpop.permute.xlu1 %261 }
 0x29c   :  { %v1767_v63 = vadd.f32 %v262_v62, %v254_v61 }
 0x29e   :  { %1515 = vtanh.f32 %v1767_v63  ;;  %v338_v44 = vrot.slane %v1767_v63, 1 }
 0x2a4   :  { %v1516_v0 = vpop.eup %1515 }
 0x2a5   :  { %267 = vrot.lane.b32.xlu2 %v1516_v0, %s1647_s4 }
 0x2ff   :  { %v268_v1 = vpop.permute.xlu2 %267 }
 0x300   :  { %v1771_v2 = vmul.f32 %v268_v1, %v251_v59 }
 0x302   :  { %v271_v3 = vpack.c.bf16 %v1771_v2, %v1771_v2 }
 0x304   :  { %273 = vrot.lane.b32.xlu2 %v271_v3, %s1648_s5 }
 0x35e   :  { %v274_v4 = vpop.permute.xlu2 %273 }
 0x35f   :  { %1454 = vmatmul.msk.bf16.vlgmr.msrb.gmra.mxu1 %vm171_vm2, %v274_v4 }
 0x360   :  { %1084 = vmatpush.bf16.msrb.mxu1 %v1730_v26 }
 0x364   :  { %1085 = vmatpush.bf16.msrb.mxu1 %v1739_v29 }
 0x3dc   :  { %v287_v5 = vpop.f32.mrf.mxu1 }
 0x3dd   :  { %v292_v6 = vrot.slane %v287_v5, 1  ;;  %v295_v7 = vadd.f32 %v287_v5, %v1761_v38 }
 0x3df   :  { %v296_v8 = vadd.f32 %v292_v6, %v1763_v40  ;;  %1517 = vtanh.f32 %v295_v7  ;;  %v1455_v12 = vmul.f32 -1.442695, %v295_v7 }
 0x3e1   :  { %1519 = vtanh.f32 %v296_v8  ;;  %v1456_v13 = vmul.f32 -1.442695, %v296_v8 }
 0x3e2   :  { %1521 = vpow2.f32 %v1455_v12 }
 0x3e3   :  { %1523 = vpow2.f32 %v1456_v13 }
 0x3e4   :  { %v289_v9 = vpop.f32.mrf.mxu1 }
 0x3e5   :  { %v1518_v10 = vpop.eup %1517 }
 0x3e6   :  { %345 = vrot.lane.b32.xlu1 %v1518_v10, %s1647_s4 }
 0x3e7   :  { %v1520_v11 = vpop.eup %1519 }
 0x3e8   :  { %347 = vrot.lane.b32.xlu0 %v1520_v11, %s1647_s4  ;;  %v1522_v14 = vpop.eup %1521 }
 0x3e9   :  { %v1524_v15 = vpop.eup %1523  ;;  %v303_v16 = vadd.f32 1.0, %v1522_v14 }
 0x3ea   :  { %v304_v17 = vadd.f32 1.0, %v1524_v15 }
 0x3eb   :  { %1525 = vrcp.f32 %v303_v16  ;;  %v316_v27 = vand.u32 2147483648, %v303_v16  ;;  %vm310_vm8 = vweird.f32 %v303_v16  ;;  %v314_v28 = vand.u32 2147483647, %v303_v16 }
 0x3ec   :  { %1527 = vrcp.f32 %v304_v17  ;;  %v331_v31 = vand.u32 2147483648, %v304_v17  ;;  %vm325_vm11 = vweird.f32 %v304_v17  ;;  %v329_v33 = vand.u32 2147483647, %v304_v17 }
 0x3ed   :  { %v317_v32 = vor.u32 1.1754944e-38, %v316_v27  ;;  %vm315_vm12 = vcmp.eq.f32.partialorder %v314_v28, 8.507059e+37 }
 0x3ee   :  { %v332_v39 = vor.u32 1.1754944e-38, %v331_v31  ;;  %vm330_vm14 = vcmp.eq.f32.partialorder %v329_v33, 8.507059e+37 }
 0x3f1   :  { %v1526_v18 = vpop.eup %1525 }
 0x3f2   :  { %v1528_v19 = vpop.eup %1527  ;;  %v306_v20 = vmul.f32 %v1526_v18, %v303_v16  ;;  %vm311_vm7 = vweird.f32 %v1526_v18 }
 0x3f3   :  { %v321_v21 = vmul.f32 %v1528_v19, %v304_v17  ;;  %vm312_vm9 = vmor %vm310_vm8, %vm311_vm7  ;;  %vm326_vm10 = vweird.f32 %v1528_v19 }
 0x3f4   :  { %v307_v22 = vsub.f32 1.0, %v306_v20  ;;  %vm327_vm13 = vmor %vm325_vm11, %vm326_vm10  ;;  %vm1227_vm10 = vcmask 1040384  }
 0x3f5   :  { %v322_v23 = vsub.f32 1.0, %v321_v21 }
 0x3f6   :  { %v308_v24 = vmul.f32 %v1526_v18, %v307_v22 }
 0x3f7   :  { %v323_v25 = vmul.f32 %v1528_v19, %v322_v23 }
 0x3f8   :  { %v309_v26 = vadd.f32 %v1526_v18, %v308_v24 }
 0x3f9   :  { %v324_v29 = vadd.f32 %v1528_v19, %v323_v25 }
 0x3fa   :  { %v313_v30 = vsel %vm312_vm9, %v1526_v18, %v309_v26  ;;  %vm1230_vm9 = vcmask 1041408  }
 0x3fb   :  { %v318_v35 = vsel %vm315_vm12, %v317_v32, %v313_v30  ;;  %v328_v36 = vsel %vm327_vm13, %v1528_v19, %v324_v29 }
 0x3fc   :  { %v333_v42 = vsel %vm330_vm14, %v332_v39, %v328_v36  ;;  %v341_v49 = vmul.f32 %v318_v35, %v1767_v63 }
 0x3fd   :  { %v342_v45 = vmul.f32 %v338_v44, %v333_v42 }
 0x458   :  { %v346_v34 = vpop.permute.xlu1 %345 }
 0x459   :  { %v351_v37 = vmul.f32 %v346_v34, %v318_v35 }
 0x45a   :  { %v348_v41 = vpop.permute.xlu0 %347 }
 0x45b   :  { %355 = vrot.lane.b32.xlu0 %v351_v37, %s1648_s5  ;;  %v352_v43 = vmul.f32 %v348_v41, %v333_v42 }
 0x45d   :  { %357 = vrot.lane.b32.xlu2 %v352_v43, %s1648_s5 }
 0x4b7   :  { %v358_v46 = vpop.permute.xlu2 %357 }
 0x4b8   :  { %v1786_v47 = vadd.f32 %v358_v46, %v342_v45 }
 0x4ba   :  { %1529 = vtanh.f32 %v1786_v47  ;;  %v452_v41 = vrot.slane %v1786_v47, 7 }
 0x4c0   :  { %v1530_v48 = vpop.eup %1529 }
 0x4c1   :  { %369 = vrot.lane.b32.xlu1 %v1530_v48, %s1647_s4 }
 0x4cd   :  { %v356_v50 = vpop.permute.xlu0 %355 }
 0x4ce   :  { %v1791_v51 = vadd.f32 %v356_v50, %v341_v49 }
 0x4d0   :  { %1531 = vtanh.f32 %v1791_v51  ;;  %v451_v46 = vrot.slane %v1791_v51, 7 }
 0x4d6   :  { %v1532_v52 = vpop.eup %1531 }
 0x4d7   :  { %367 = vrot.lane.b32.xlu2 %v1532_v52, %s1647_s4 }
 0x531   :  { %v368_v53 = vpop.permute.xlu2 %367 }
 0x532   :  { %v1795_v54 = vmul.f32 %v368_v53, %v318_v35 }
 0x533   :  { %v370_v55 = vpop.permute.xlu1 %369 }
 0x534   :  { %v1797_v56 = vmul.f32 %v370_v55, %v333_v42  ;;  %v375_v57 = vpack.c.bf16 %v1795_v54, %v1795_v54 }
 0x536   :  { %v376_v58 = vpack.c.bf16 %v1797_v56, %v1797_v56  ;;  %v379_v60 = vunpack.c.l.b16 %v375_v57  ;;  %v1184_v47 = vrot.slane %v1797_v56, 7  ;;  %v1179_v57 = vrot.slane %v1771_v2, 1 }
 0x538   :  { %v380_v59 = vunpack.c.l.b16 %v376_v58  ;;  %v1183_v58 = vrot.slane %v1795_v54, 7 }
 0x53a   :  { %v381_v61 = vrot.slane %v380_v59, 7 }
 0x53c   :  { %v383_v62 = vsel %vm382_vm15, %v381_v61, %v379_v60  ;;  %v1229_v60 = vsel %vm1227_vm10, %v1179_v57, %v1184_v47 }
 0x53d   :  { %v384_v63 = vpack.c.b16 %v383_v62, %v383_v62 }
 0x53f   :  { %385 = vrot.lane.b32.xlu0 %v384_v63, %s1648_s5 }
 0x5b1   :  { %v386_v0 = vpop.permute.xlu0 %385 }
 0x5b2   :  { %1457 = vmatmul.msk.bf16.vlgmr.msra.gmra.mxu2 %vm171_vm2, %v386_v0 }
 0x635   :  { %v399_v1 = vpop.f32.mrf.mxu2 }
 0x636   :  { %v404_v3 = vrot.slane %v399_v1, 7  ;;  %v408_v4 = vadd.f32 %v399_v1, %v1763_v40 }
 0x638   :  { %v407_v5 = vadd.f32 %v404_v3, %v1761_v38  ;;  %1533 = vtanh.f32 %v408_v4  ;;  %v1459_v9 = vmul.f32 -1.442695, %v408_v4  ;;  %v1228_v3 = vsel %vm1227_vm10, %v1771_v2, %v1183_v58 }
 0x63a   :  { %1535 = vtanh.f32 %v407_v5  ;;  %v1458_v14 = vmul.f32 -1.442695, %v407_v5 }
 0x63b   :  { %1537 = vpow2.f32 %v1459_v9 }
 0x63d   :  { %v401_v6 = vpop.f32.mrf.mxu2 }
 0x63e   :  { %v1534_v7 = vpop.eup %1533 }
 0x63f   :  { %461 = vrot.lane.b32.xlu2 %v1534_v7, %s1647_s4 }
 0x640   :  { %v1536_v8 = vpop.eup %1535 }
 0x641   :  { %459 = vrot.lane.b32.xlu1 %v1536_v8, %s1647_s4  ;;  %v1538_v10 = vpop.eup %1537 }
 0x642   :  { %v416_v11 = vadd.f32 1.0, %v1538_v10 }
 0x644   :  { %1539 = vrcp.f32 %v416_v11  ;;  %v443_v19 = vand.u32 2147483648, %v416_v11  ;;  %vm437_vm1 = vweird.f32 %v416_v11  ;;  %v441_v21 = vand.u32 2147483647, %v416_v11 }
 0x645   :  { %1541 = vpow2.f32 %v1458_v14 }
 0x646   :  { %v444_v23 = vor.u32 1.1754944e-38, %v443_v19  ;;  %vm442_vm4 = vcmp.eq.f32.partialorder %v441_v21, 8.507059e+37 }
 0x64a   :  { %v1540_v12 = vpop.eup %1539 }
 0x64b   :  { %v433_v13 = vmul.f32 %v1540_v12, %v416_v11  ;;  %v1542_v17 = vpop.eup %1541  ;;  %vm438_vm0 = vweird.f32 %v1540_v12 }
 0x64c   :  { %v415_v20 = vadd.f32 1.0, %v1542_v17  ;;  %vm439_vm3 = vmor %vm437_vm1, %vm438_vm0 }
 0x64d   :  { %v434_v15 = vsub.f32 1.0, %v433_v13 }
 0x64e   :  { %1543 = vrcp.f32 %v415_v20  ;;  %v428_v32 = vand.u32 2147483648, %v415_v20  ;;  %vm422_vm6 = vweird.f32 %v415_v20  ;;  %v426_v33 = vand.u32 2147483647, %v415_v20 }
 0x64f   :  { %v435_v16 = vmul.f32 %v1540_v12, %v434_v15 }
 0x650   :  { %v429_v35 = vor.u32 1.1754944e-38, %v428_v32  ;;  %vm427_vm8 = vcmp.eq.f32.partialorder %v426_v33, 8.507059e+37 }
 0x651   :  { %v436_v18 = vadd.f32 %v1540_v12, %v435_v16 }
 0x653   :  { %v440_v22 = vsel %vm439_vm3, %v1540_v12, %v436_v18 }
 0x654   :  { %v445_v25 = vsel %vm442_vm4, %v444_v23, %v440_v22  ;;  %v1544_v27 = vpop.eup %1543 }
 0x655   :  { %v418_v28 = vmul.f32 %v1544_v27, %v415_v20  ;;  %vm423_vm5 = vweird.f32 %v1544_v27  ;;  %v456_v42 = vmul.f32 %v452_v41, %v445_v25 }
 0x656   :  { %vm424_vm7 = vmor %vm422_vm6, %vm423_vm5  ;;  %vm1233_vm5 = vcmask 1042432  }
 0x657   :  { %v419_v29 = vsub.f32 1.0, %v418_v28 }
 0x659   :  { %v420_v30 = vmul.f32 %v1544_v27, %v419_v29 }
 0x65b   :  { %v421_v31 = vadd.f32 %v1544_v27, %v420_v30 }
 0x65d   :  { %v425_v34 = vsel %vm424_vm7, %v1544_v27, %v421_v31 }
 0x65e   :  { %v430_v37 = vsel %vm427_vm8, %v429_v35, %v425_v34 }
 0x65f   :  { %v455_v48 = vmul.f32 %v451_v46, %v430_v37 }
 0x699   :  { %v462_v24 = vpop.permute.xlu2 %461 }
 0x69a   :  { %v466_v26 = vmul.f32 %v462_v24, %v445_v25 }
 0x69c   :  { %471 = vrot.lane.b32.xlu1 %v466_v26, %s1648_s5 }
 0x6b3   :  { %v460_v36 = vpop.permute.xlu1 %459 }
 0x6b4   :  { %v465_v39 = vmul.f32 %v460_v36, %v430_v37 }
 0x6b6   :  { %469 = vrot.lane.b32.xlu0 %v465_v39, %s1648_s5 }
 0x70e   :  { %v472_v43 = vpop.permute.xlu1 %471 }
 0x70f   :  { %v1813_v44 = vadd.f32 %v472_v43, %v456_v42 }
 0x711   :  { %1545 = vtanh.f32 %v1813_v44  ;;  %v566_v47 = vrot.slane %v1813_v44, 7 }
 0x717   :  { %v1546_v45 = vpop.eup %1545 }
 0x718   :  { %483 = vrot.lane.b32.xlu0 %v1546_v45, %s1647_s4 }
 0x728   :  { %v470_v49 = vpop.permute.xlu0 %469 }
 0x729   :  { %v1818_v50 = vadd.f32 %v470_v49, %v455_v48 }
 0x72b   :  { %1547 = vtanh.f32 %v1818_v50 }
 0x731   :  { %v1548_v52 = vpop.eup %1547 }
 0x732   :  { %481 = vrot.lane.b32.xlu2 %v1548_v52, %s1647_s4  ;;  %v565_v52 = vrot.slane %v1818_v50, 7 }
 0x78a   :  { %v484_v53 = vpop.permute.xlu0 %483 }
 0x78b   :  { %v488_v55 = vmul.f32 %v484_v53, %v445_v25 }
 0x78c   :  { %v482_v59 = vpop.permute.xlu2 %481 }
 0x78d   :  { %v1190_v51 = vrot.slane %v488_v55, 7  ;;  %v487_v61 = vmul.f32 %v482_v59, %v430_v37  ;;  %v490_v63 = vpack.c.bf16 %v488_v55, %v488_v55 }
 0x78f   :  { %v1825_v62 = vsel %vm1230_vm9, %v1229_v60, %v1190_v51  ;;  %v489_v0 = vpack.c.bf16 %v487_v61, %v487_v61  ;;  %v1189_v1 = vrot.slane %v487_v61, 7  ;;  %v494_v5 = vunpack.c.l.b16 %v490_v63 }
 0x791   :  { %v493_v56 = vunpack.c.l.b16 %v489_v0  ;;  %v1828_v4 = vsel %vm1230_vm9, %v1228_v3, %v1189_v1 }
 0x793   :  { %v495_v6 = vrot.slane %v493_v56, 1 }
 0x795   :  { %v496_v7 = vsel %vm382_vm15, %v494_v5, %v495_v6 }
 0x796   :  { %v497_v8 = vpack.c.b16 %v496_v7, %v496_v7 }
 0x798   :  { %498 = vrot.lane.b32.xlu1 %v497_v8, %s1648_s5 }
 0x80a   :  { %v499_v54 = vpop.permute.xlu1 %498 }
 0x80b   :  { %1460 = vmatmul.msk.bf16.vlgmr.msra.gmra.mxu3 %vm171_vm2, %v499_v54 }
 0x88e   :  { %v512_v9 = vpop.f32.mrf.mxu3 }
 0x88f   :  { %v517_v10 = vrot.slane %v512_v9, 6  ;;  %v518_v11 = vrot.slane %v512_v9, 7 }
 0x891   :  { %v521_v12 = vadd.f32 %v517_v10, %v1761_v38  ;;  %v522_v2 = vadd.f32 %v518_v11, %v1763_v40 }
 0x893   :  { %1549 = vtanh.f32 %v521_v12  ;;  %v1461_v16 = vmul.f32 -1.442695, %v521_v12  ;;  %v1462_v20 = vmul.f32 -1.442695, %v522_v2 }
 0x894   :  { %1551 = vtanh.f32 %v522_v2 }
 0x895   :  { %1553 = vpow2.f32 %v1461_v16 }
 0x896   :  { %v514_v13 = vpop.f32.mrf.mxu3 }
 0x899   :  { %v1550_v14 = vpop.eup %1549 }
 0x89a   :  { %v1552_v15 = vpop.eup %1551  ;;  %573 = vrot.lane.b32.xlu2 %v1550_v14, %s1647_s4 }
 0x89b   :  { %575 = vrot.lane.b32.xlu0 %v1552_v15, %s1647_s4  ;;  %v1554_v17 = vpop.eup %1553 }
 0x89c   :  { %v529_v18 = vadd.f32 1.0, %v1554_v17 }
 0x89e   :  { %1555 = vrcp.f32 %v529_v18  ;;  %v542_v27 = vand.u32 2147483648, %v529_v18  ;;  %vm536_vm12 = vweird.f32 %v529_v18  ;;  %v540_v28 = vand.u32 2147483647, %v529_v18 }
 0x89f   :  { %1557 = vpow2.f32 %v1462_v20 }
 0x8a0   :  { %v543_v30 = vor.u32 1.1754944e-38, %v542_v27  ;;  %vm541_vm14 = vcmp.eq.f32.partialorder %v540_v28, 8.507059e+37 }
 0x8a4   :  { %v1556_v19 = vpop.eup %1555 }
 0x8a5   :  { %v532_v21 = vmul.f32 %v1556_v19, %v529_v18  ;;  %v1558_v24 = vpop.eup %1557  ;;  %vm537_vm11 = vweird.f32 %v1556_v19 }
 0x8a6   :  { %v530_v25 = vadd.f32 1.0, %v1558_v24  ;;  %vm538_vm13 = vmor %vm536_vm12, %vm537_vm11 }
 0x8a7   :  { %v533_v22 = vsub.f32 1.0, %v532_v21 }
 0x8a8   :  { %1559 = vrcp.f32 %v530_v25  ;;  %v557_v41 = vand.u32 2147483648, %v530_v25  ;;  %vm551_vm1 = vweird.f32 %v530_v25  ;;  %v555_v42 = vand.u32 2147483647, %v530_v25 }
 0x8a9   :  { %v534_v23 = vmul.f32 %v1556_v19, %v533_v22 }
 0x8aa   :  { %v558_v45 = vor.u32 1.1754944e-38, %v557_v41  ;;  %vm556_vm4 = vcmp.eq.f32.partialorder %v555_v42, 8.507059e+37 }
 0x8ab   :  { %v535_v26 = vadd.f32 %v1556_v19, %v534_v23 }
 0x8ad   :  { %v539_v29 = vsel %vm538_vm13, %v1556_v19, %v535_v26 }
 0x8ae   :  { %v544_v32 = vsel %vm541_vm14, %v543_v30, %v539_v29  ;;  %v1560_v34 = vpop.eup %1559  ;;  %vm1236_vm14 = vcmask 1043456  }
 0x8af   :  { %v547_v35 = vmul.f32 %v1560_v34, %v530_v25  ;;  %vm552_vm0 = vweird.f32 %v1560_v34  ;;  %v569_v53 = vmul.f32 %v565_v52, %v544_v32 }
 0x8b0   :  { %vm553_vm3 = vmor %vm551_vm1, %vm552_vm0 }
 0x8b1   :  { %v548_v36 = vsub.f32 1.0, %v547_v35 }
 0x8b3   :  { %v549_v37 = vmul.f32 %v1560_v34, %v548_v36 }
 0x8b5   :  { %v550_v39 = vadd.f32 %v1560_v34, %v549_v37 }
 0x8b7   :  { %v554_v43 = vsel %vm553_vm3, %v1560_v34, %v550_v39 }
 0x8b8   :  { %v559_v48 = vsel %vm556_vm4, %v558_v45, %v554_v43 }
 0x8b9   :  { %v570_v55 = vmul.f32 %v566_v47, %v559_v48 }
 0x8f4   :  { %v574_v31 = vpop.permute.xlu2 %573 }
 0x8f5   :  { %v579_v33 = vmul.f32 %v574_v31, %v544_v32 }
 0x8f7   :  { %583 = vrot.lane.b32.xlu1 %v579_v33, %s1648_s5 }
 0x90d   :  { %v576_v46 = vpop.permute.xlu0 %575 }
 0x90e   :  { %v580_v49 = vmul.f32 %v576_v46, %v559_v48 }
 0x910   :  { %585 = vrot.lane.b32.xlu2 %v580_v49, %s1648_s5 }
 0x969   :  { %v584_v57 = vpop.permute.xlu1 %583 }
 0x96a   :  { %v586_v58 = vpop.permute.xlu2 %585  ;;  %v1841_v51 = vadd.f32 %v584_v57, %v569_v53 }
 0x96b   :  { %v1843_v59 = vadd.f32 %v586_v58, %v570_v55 }
 0x96c   :  { %1561 = vtanh.f32 %v1841_v51  ;;  %v680_v55 = vrot.slane %v1841_v51, 7 }
 0x96d   :  { %1563 = vtanh.f32 %v1843_v59 }
 0x972   :  { %v1562_v60 = vpop.eup %1561 }
 0x973   :  { %v1564_v61 = vpop.eup %1563  ;;  %595 = vrot.lane.b32.xlu0 %v1562_v60, %s1647_s4 }
 0x974   :  { %597 = vrot.lane.b32.xlu1 %v1564_v61, %s1647_s4 }
 0x9e5   :  { %v596_v50 = vpop.permute.xlu0 %595 }
 0x9e6   :  { %v598_v44 = vpop.permute.xlu1 %597  ;;  %v601_v63 = vmul.f32 %v596_v50, %v544_v32  ;;  %v681_v50 = vrot.slane %v1843_v59, 7 }
 0x9e7   :  { %v602_v0 = vmul.f32 %v598_v44, %v559_v48 }
 0x9e8   :  { %v603_v1 = vpack.c.bf16 %v601_v63, %v601_v63  ;;  %v1195_v3 = vrot.slane %v601_v63, 7 }
 0x9e9   :  { %v604_v56 = vpack.c.bf16 %v602_v0, %v602_v0  ;;  %v1196_v5 = vrot.slane %v602_v0, 7 }
 0x9ea   :  { %v607_v6 = vunpack.c.l.b16 %v603_v1  ;;  %v1850_v7 = vsel %vm1233_vm5, %v1828_v4, %v1195_v3 }
 0x9eb   :  { %v608_v8 = vunpack.c.l.b16 %v604_v56  ;;  %v1853_v54 = vsel %vm1233_vm5, %v1825_v62, %v1196_v5 }
 0x9ec   :  { %v609_v9 = vrot.slane %v607_v6, 2 }
 0x9ed   :  { %v610_v10 = vrot.slane %v608_v8, 1 }
 0x9ef   :  { %v611_v11 = vsel %vm382_vm15, %v610_v10, %v609_v9 }
 0x9f0   :  { %v612_v12 = vpack.c.b16 %v611_v11, %v611_v11 }
 0x9f2   :  { %613 = vrot.lane.b32.xlu2 %v612_v12, %s1648_s5 }
 0xa4c   :  { %v614_v2 = vpop.permute.xlu2 %613 }
 0xa4d   :  { %1463 = vmatmul.msk.bf16.vlgmr.msra.gmra.mxu1 %vm171_vm2, %v614_v2 }
 0xaca   :  { %v627_v13 = vpop.f32.mrf.mxu1 }
 0xacb   :  { %v632_v14 = vrot.slane %v627_v13, 5  ;;  %v633_v15 = vrot.slane %v627_v13, 6 }
 0xacd   :  { %v636_v4 = vadd.f32 %v632_v14, %v1761_v38  ;;  %v637_v16 = vadd.f32 %v633_v15, %v1763_v40 }
 0xacf   :  { %1565 = vtanh.f32 %v636_v4  ;;  %v1464_v19 = vmul.f32 -1.442695, %v636_v4  ;;  %v1465_v20 = vmul.f32 -1.442695, %v637_v16 }
 0xad0   :  { %1567 = vtanh.f32 %v637_v16 }
 0xad1   :  { %1569 = vpow2.f32 %v1464_v19 }
 0xad2   :  { %v629_v62 = vpop.f32.mrf.mxu1  ;;  %1571 = vpow2.f32 %v1465_v20 }
 0xad5   :  { %v1566_v17 = vpop.eup %1565 }
 0xad6   :  { %v1568_v18 = vpop.eup %1567  ;;  %688 = vrot.lane.b32.xlu0 %v1566_v17, %s1647_s4 }
 0xad7   :  { %690 = vrot.lane.b32.xlu1 %v1568_v18, %s1647_s4  ;;  %v1570_v21 = vpop.eup %1569 }
 0xad8   :  { %v1572_v22 = vpop.eup %1571  ;;  %v644_v23 = vadd.f32 1.0, %v1570_v21 }
 0xad9   :  { %v645_v24 = vadd.f32 1.0, %v1572_v22 }
 0xada   :  { %1573 = vrcp.f32 %v644_v23  ;;  %v657_v35 = vand.u32 2147483648, %v644_v23  ;;  %vm651_vm8 = vweird.f32 %v644_v23  ;;  %v655_v37 = vand.u32 2147483647, %v644_v23 }
 0xadb   :  { %1575 = vrcp.f32 %v645_v24  ;;  %v672_v36 = vand.u32 2147483648, %v645_v24  ;;  %vm666_vm9 = vweird.f32 %v645_v24  ;;  %v670_v39 = vand.u32 2147483647, %v645_v24 }
 0xadc   :  { %v658_v43 = vor.u32 1.1754944e-38, %v657_v35  ;;  %vm656_vm12 = vcmp.eq.f32.partialorder %v655_v37, 8.507059e+37 }
 0xadd   :  { %v673_v45 = vor.u32 1.1754944e-38, %v672_v36  ;;  %vm671_vm13 = vcmp.eq.f32.partialorder %v670_v39, 8.507059e+37 }
 0xae0   :  { %v1574_v25 = vpop.eup %1573 }
 0xae1   :  { %v1576_v26 = vpop.eup %1575  ;;  %v647_v27 = vmul.f32 %v1574_v25, %v644_v23  ;;  %vm652_vm6 = vweird.f32 %v1574_v25 }
 0xae2   :  { %v662_v28 = vmul.f32 %v1576_v26, %v645_v24  ;;  %vm667_vm7 = vweird.f32 %v1576_v26  ;;  %vm653_vm10 = vmor %vm651_vm8, %vm652_vm6 }
 0xae3   :  { %v648_v29 = vsub.f32 1.0, %v647_v27  ;;  %vm668_vm11 = vmor %vm666_vm9, %vm667_vm7  ;;  %vm1239_vm9 = vcmask 1044480  }
 0xae4   :  { %v663_v30 = vsub.f32 1.0, %v662_v28 }
 0xae5   :  { %v649_v31 = vmul.f32 %v1574_v25, %v648_v29 }
 0xae6   :  { %v664_v32 = vmul.f32 %v1576_v26, %v663_v30 }
 0xae7   :  { %v650_v33 = vadd.f32 %v1574_v25, %v649_v31 }
 0xae8   :  { %v665_v34 = vadd.f32 %v1576_v26, %v664_v32 }
 0xae9   :  { %v654_v41 = vsel %vm653_vm10, %v1574_v25, %v650_v33 }
 0xaea   :  { %v669_v42 = vsel %vm668_vm11, %v1576_v26, %v665_v34  ;;  %v659_v48 = vsel %vm656_vm12, %v658_v43, %v654_v41 }
 0xaeb   :  { %v674_v52 = vsel %vm671_vm13, %v673_v45, %v669_v42  ;;  %v684_v57 = vmul.f32 %v680_v55, %v659_v48 }
 0xaec   :  { %v685_v44 = vmul.f32 %v681_v50, %v674_v52 }
 0xb48   :  { %v689_v46 = vpop.permute.xlu0 %688 }
 0xb49   :  { %v691_v49 = vpop.permute.xlu1 %690  ;;  %v694_v47 = vmul.f32 %v689_v46, %v659_v48 }
 0xb4a   :  { %v695_v53 = vmul.f32 %v691_v49, %v674_v52 }
 0xb4b   :  { %698 = vrot.lane.b32.xlu2 %v694_v47, %s1648_s5 }
 0xb4c   :  { %700 = vrot.lane.b32.xlu0 %v695_v53, %s1648_s5 }
 0xba5   :  { %v699_v58 = vpop.permute.xlu2 %698 }
 0xba6   :  { %v1865_v60 = vadd.f32 %v699_v58, %v684_v57 }
 0xba8   :  { %1577 = vtanh.f32 %v1865_v60 }
 0xbae   :  { %v1578_v61 = vpop.eup %1577 }
 0xbaf   :  { %710 = vrot.lane.b32.xlu1 %v1578_v61, %s1647_s4 }
 0xbbe   :  { %v701_v63 = vpop.permute.xlu0 %700 }
 0xbbf   :  { %v1870_v0 = vadd.f32 %v701_v63, %v685_v44 }
 0xbc1   :  { %1579 = vtanh.f32 %v1870_v0  ;;  %v796_v61 = vrot.slane %v1870_v0, 7 }
 0xbc7   :  { %v1580_v1 = vpop.eup %1579 }
 0xbc8   :  { %712 = vrot.lane.b32.xlu2 %v1580_v1, %s1647_s4 }
 0xc21   :  { %v711_v51 = vpop.permute.xlu1 %710 }
 0xc22   :  { %v713_v3 = vpop.permute.xlu2 %712  ;;  %v716_v56 = vmul.f32 %v711_v51, %v659_v48  ;;  %v795_v51 = vrot.slane %v1865_v60, 7 }
 0xc23   :  { %v717_v5 = vmul.f32 %v713_v3, %v674_v52 }
 0xc24   :  { %v718_v6 = vpack.c.bf16 %v716_v56, %v716_v56  ;;  %v1201_v8 = vrot.slane %v716_v56, 7 }
 0xc25   :  { %v719_v9 = vpack.c.bf16 %v717_v5, %v717_v5  ;;  %v1202_v10 = vrot.slane %v717_v5, 7 }
 0xc26   :  { %v722_v11 = vunpack.c.l.b16 %v718_v6  ;;  %v1875_v59 = vsel %vm1236_vm14, %v1850_v7, %v1201_v8 }
 0xc27   :  { %v723_v12 = vunpack.c.l.b16 %v719_v9  ;;  %v1878_v2 = vsel %vm1236_vm14, %v1853_v54, %v1202_v10 }
 0xc28   :  { %v724_v13 = vrot.slane %v722_v11, 3 }
 0xc29   :  { %v725_v14 = vrot.slane %v723_v12, 2 }
 0xc2b   :  { %v726_v15 = vsel %vm382_vm15, %v725_v14, %v724_v13 }
 0xc2c   :  { %v727_v4 = vpack.c.b16 %v726_v15, %v726_v15 }
 0xc2e   :  { %728 = vrot.lane.b32.xlu0 %v727_v4, %s1648_s5 }
 0xca0   :  { %v729_v16 = vpop.permute.xlu0 %728 }
 0xca1   :  { %1466 = vmatmul.msk.bf16.vlgmr.msrb.gmra.mxu2 %vm171_vm2, %v729_v16 }
 0xd24   :  { %v742_v62 = vpop.f32.mrf.mxu2 }
 0xd25   :  { %v747_v17 = vrot.slane %v742_v62, 4  ;;  %v748_v18 = vrot.slane %v742_v62, 5 }
 0xd27   :  { %v751_v7 = vadd.f32 %v747_v17, %v1761_v38  ;;  %v752_v19 = vadd.f32 %v748_v18, %v1763_v40 }
 0xd29   :  { %1581 = vtanh.f32 %v751_v7  ;;  %v1468_v22 = vmul.f32 -1.442695, %v752_v19  ;;  %v1467_v26 = vmul.f32 -1.442695, %v751_v7 }
 0xd2a   :  { %1583 = vtanh.f32 %v752_v19 }
 0xd2b   :  { %1585 = vpow2.f32 %v1468_v22 }
 0xd2c   :  { %v744_v54 = vpop.f32.mrf.mxu2 }
 0xd2f   :  { %v1582_v20 = vpop.eup %1581 }
 0xd30   :  { %v1584_v21 = vpop.eup %1583  ;;  %803 = vrot.lane.b32.xlu1 %v1582_v20, %s1647_s4 }
 0xd31   :  { %805 = vrot.lane.b32.xlu2 %v1584_v21, %s1647_s4  ;;  %v1586_v23 = vpop.eup %1585 }
 0xd32   :  { %v760_v24 = vadd.f32 1.0, %v1586_v23 }
 0xd34   :  { %1587 = vrcp.f32 %v760_v24  ;;  %v787_v33 = vand.u32 2147483648, %v760_v24  ;;  %vm781_vm1 = vweird.f32 %v760_v24  ;;  %v785_v34 = vand.u32 2147483647, %v760_v24 }
 0xd35   :  { %1589 = vpow2.f32 %v1467_v26 }
 0xd36   :  { %v788_v36 = vor.u32 1.1754944e-38, %v787_v33  ;;  %vm786_vm4 = vcmp.eq.f32.partialorder %v785_v34, 8.507059e+37 }
 0xd3a   :  { %v1588_v25 = vpop.eup %1587 }
 0xd3b   :  { %v777_v27 = vmul.f32 %v1588_v25, %v760_v24  ;;  %v1590_v29 = vpop.eup %1589  ;;  %vm782_vm0 = vweird.f32 %v1588_v25 }
 0xd3c   :  { %v759_v31 = vadd.f32 1.0, %v1590_v29  ;;  %vm783_vm3 = vmor %vm781_vm1, %vm782_vm0 }
 0xd3d   :  { %v778_v28 = vsub.f32 1.0, %v777_v27 }
 0xd3e   :  { %1591 = vrcp.f32 %v759_v31  ;;  %v772_v49 = vand.u32 2147483648, %v759_v31  ;;  %vm766_vm6 = vweird.f32 %v759_v31  ;;  %v770_v52 = vand.u32 2147483647, %v759_v31 }
 0xd3f   :  { %v779_v30 = vmul.f32 %v1588_v25, %v778_v28 }
 0xd40   :  { %v773_v53 = vor.u32 1.1754944e-38, %v772_v49  ;;  %vm771_vm8 = vcmp.eq.f32.partialorder %v770_v52, 8.507059e+37 }
 0xd41   :  { %v780_v32 = vadd.f32 %v1588_v25, %v779_v30 }
 0xd43   :  { %v784_v35 = vsel %vm783_vm3, %v1588_v25, %v780_v32 }
 0xd44   :  { %v789_v39 = vsel %vm786_vm4, %v788_v36, %v784_v35  ;;  %v1592_v41 = vpop.eup %1591  ;;  %vm1242_vm4 = vcmask 1045504  }
 0xd45   :  { %v762_v43 = vmul.f32 %v1592_v41, %v759_v31  ;;  %vm767_vm5 = vweird.f32 %v1592_v41  ;;  %v800_v50 = vmul.f32 %v796_v61, %v789_v39 }
 0xd46   :  { %vm768_vm7 = vmor %vm766_vm6, %vm767_vm5 }
 0xd47   :  { %v763_v45 = vsub.f32 1.0, %v762_v43 }
 0xd49   :  { %v764_v46 = vmul.f32 %v1592_v41, %v763_v45 }
 0xd4b   :  { %v765_v48 = vadd.f32 %v1592_v41, %v764_v46 }
 0xd4d   :  { %v769_v47 = vsel %vm768_vm7, %v1592_v41, %v765_v48 }
 0xd4e   :  { %v774_v57 = vsel %vm771_vm8, %v773_v53, %v769_v47 }
 0xd4f   :  { %v799_v3 = vmul.f32 %v795_v51, %v774_v57 }
 0xd8b   :  { %v806_v37 = vpop.permute.xlu2 %805 }
 0xd8c   :  { %v810_v42 = vmul.f32 %v806_v37, %v789_v39 }
 0xd8e   :  { %815 = vrot.lane.b32.xlu1 %v810_v42, %s1648_s5 }
 0xda2   :  { %v804_v55 = vpop.permute.xlu1 %803 }
 0xda3   :  { %v809_v58 = vmul.f32 %v804_v55, %v774_v57 }
 0xda5   :  { %813 = vrot.lane.b32.xlu0 %v809_v58, %s1648_s5 }
 0xe00   :  { %v816_v44 = vpop.permute.xlu1 %815 }
 0xe01   :  { %v1890_v63 = vadd.f32 %v816_v44, %v800_v50 }
 0xe03   :  { %1593 = vtanh.f32 %v1890_v63  ;;  %v911_v51 = vrot.slane %v1890_v63, 7 }
 0xe09   :  { %v1594_v1 = vpop.eup %1593 }
 0xe0a   :  { %827 = vrot.lane.b32.xlu0 %v1594_v1, %s1647_s4 }
 0xe17   :  { %v814_v56 = vpop.permute.xlu0 %813 }
 0xe18   :  { %v1895_v5 = vadd.f32 %v814_v56, %v799_v3 }
 0xe1a   :  { %1595 = vtanh.f32 %v1895_v5  ;;  %v910_v1 = vrot.slane %v1895_v5, 7 }
 0xe20   :  { %v1596_v6 = vpop.eup %1595 }
 0xe21   :  { %825 = vrot.lane.b32.xlu2 %v1596_v6, %s1647_s4 }
 0xe7b   :  { %v826_v0 = vpop.permute.xlu2 %825 }
 0xe7c   :  { %v828_v8 = vpop.permute.xlu0 %827  ;;  %v831_v9 = vmul.f32 %v826_v0, %v774_v57 }
 0xe7d   :  { %v832_v10 = vmul.f32 %v828_v8, %v789_v39 }
 0xe7e   :  { %v833_v11 = vpack.c.bf16 %v831_v9, %v831_v9  ;;  %v1207_v12 = vrot.slane %v831_v9, 7 }
 0xe7f   :  { %v834_v13 = vpack.c.bf16 %v832_v10, %v832_v10  ;;  %v1208_v14 = vrot.slane %v832_v10, 7 }
 0xe80   :  { %v837_v15 = vunpack.c.l.b16 %v833_v11  ;;  %v1900_v60 = vsel %vm1239_vm9, %v1875_v59, %v1207_v12 }
 0xe81   :  { %v838_v4 = vunpack.c.l.b16 %v834_v13  ;;  %v1903_v16 = vsel %vm1239_vm9, %v1878_v2, %v1208_v14 }
 0xe82   :  { %v839_v62 = vrot.slane %v837_v15, 4 }
 0xe83   :  { %v840_v17 = vrot.slane %v838_v4, 3 }
 0xe85   :  { %v841_v18 = vsel %vm382_vm15, %v840_v17, %v839_v62 }
 0xe86   :  { %v842_v7 = vpack.c.b16 %v841_v18, %v841_v18 }
 0xe88   :  { %843 = vrot.lane.b32.xlu1 %v842_v7, %s1648_s5 }
 0xefa   :  { %v844_v19 = vpop.permute.xlu1 %843 }
 0xefb   :  { %1469 = vmatmul.msk.bf16.vlgmr.msrb.gmra.mxu3 %vm171_vm2, %v844_v19 }
 0xf7e   :  { %v857_v54 = vpop.f32.mrf.mxu3 }
 0xf7f   :  { %v862_v20 = vrot.slane %v857_v54, 3  ;;  %v863_v21 = vrot.slane %v857_v54, 4 }
 0xf81   :  { %v866_v59 = vadd.f32 %v862_v20, %v1761_v38  ;;  %v867_v22 = vadd.f32 %v863_v21, %v1763_v40 }
 0xf83   :  { %1597 = vtanh.f32 %v866_v59  ;;  %v1470_v25 = vmul.f32 -1.442695, %v866_v59  ;;  %v1471_v29 = vmul.f32 -1.442695, %v867_v22 }
 0xf84   :  { %1599 = vtanh.f32 %v867_v22 }
 0xf85   :  { %1601 = vpow2.f32 %v1470_v25 }
 0xf86   :  { %v859_v2 = vpop.f32.mrf.mxu3 }
 0xf89   :  { %v1598_v23 = vpop.eup %1597 }
 0xf8a   :  { %v1600_v24 = vpop.eup %1599  ;;  %918 = vrot.lane.b32.xlu2 %v1598_v23, %s1647_s4 }
 0xf8b   :  { %920 = vrot.lane.b32.xlu0 %v1600_v24, %s1647_s4  ;;  %v1602_v26 = vpop.eup %1601 }
 0xf8c   :  { %v874_v27 = vadd.f32 1.0, %v1602_v26 }
 0xf8e   :  { %1603 = vrcp.f32 %v874_v27  ;;  %v887_v36 = vand.u32 2147483648, %v874_v27  ;;  %vm881_vm11 = vweird.f32 %v874_v27  ;;  %v885_v37 = vand.u32 2147483647, %v874_v27 }
 0xf8f   :  { %1605 = vpow2.f32 %v1471_v29 }
 0xf90   :  { %v888_v41 = vor.u32 1.1754944e-38, %v887_v36  ;;  %vm886_vm13 = vcmp.eq.f32.partialorder %v885_v37, 8.507059e+37 }
 0xf94   :  { %v1604_v28 = vpop.eup %1603 }
 0xf95   :  { %v877_v30 = vmul.f32 %v1604_v28, %v874_v27  ;;  %v1606_v33 = vpop.eup %1605  ;;  %vm882_vm10 = vweird.f32 %v1604_v28 }
 0xf96   :  { %v875_v34 = vadd.f32 1.0, %v1606_v33  ;;  %vm883_vm12 = vmor %vm881_vm11, %vm882_vm10 }
 0xf97   :  { %v878_v31 = vsub.f32 1.0, %v877_v30 }
 0xf98   :  { %1607 = vrcp.f32 %v875_v34  ;;  %v902_v53 = vand.u32 2147483648, %v875_v34  ;;  %vm896_vm0 = vweird.f32 %v875_v34  ;;  %v900_v55 = vand.u32 2147483647, %v875_v34 }
 0xf99   :  { %v879_v32 = vmul.f32 %v1604_v28, %v878_v31 }
 0xf9a   :  { %v903_v58 = vor.u32 1.1754944e-38, %v902_v53  ;;  %vm901_vm3 = vcmp.eq.f32.partialorder %v900_v55, 8.507059e+37 }
 0xf9b   :  { %v880_v35 = vadd.f32 %v1604_v28, %v879_v32 }
 0xf9d   :  { %v884_v39 = vsel %vm883_vm12, %v1604_v28, %v880_v35 }
 0xf9e   :  { %v889_v43 = vsel %vm886_vm13, %v888_v41, %v884_v39  ;;  %v1608_v46 = vpop.eup %1607  ;;  %vm1245_vm13 = vcmask 1046528  }
 0xf9f   :  { %v892_v48 = vmul.f32 %v1608_v46, %v875_v34  ;;  %vm897_vm14 = vweird.f32 %v1608_v46  ;;  %v914_v3 = vmul.f32 %v910_v1, %v889_v43 }
 0xfa0   :  { %vm898_vm1 = vmor %vm896_vm0, %vm897_vm14 }
 0xfa1   :  { %v893_v49 = vsub.f32 1.0, %v892_v48 }
 0xfa3   :  { %v894_v52 = vmul.f32 %v1608_v46, %v893_v49 }
 0xfa5   :  { %v895_v47 = vadd.f32 %v1608_v46, %v894_v52 }
 0xfa7   :  { %v899_v57 = vsel %vm898_vm1, %v1608_v46, %v895_v47 }
 0xfa8   :  { %v904_v50 = vsel %vm901_vm3, %v903_v58, %v899_v57 }
 0xfa9   :  { %v915_v56 = vmul.f32 %v911_v51, %v904_v50 }
 0xfe4   :  { %v919_v42 = vpop.permute.xlu2 %918 }
 0xfe5   :  { %v924_v45 = vmul.f32 %v919_v42, %v889_v43 }
 0xfe7   :  { %928 = vrot.lane.b32.xlu1 %v924_v45, %s1648_s5 }
 0xffd   :  { %v921_v61 = vpop.permute.xlu0 %920 }
 0xffe   :  { %v925_v44 = vmul.f32 %v921_v61, %v904_v50 }
0x1000   :  { %930 = vrot.lane.b32.xlu2 %v925_v44, %s1648_s5 }
0x1059   :  { %v929_v6 = vpop.permute.xlu1 %928 }
0x105a   :  { %v931_v0 = vpop.permute.xlu2 %930  ;;  %v1916_v8 = vadd.f32 %v929_v6, %v914_v3 }
0x105b   :  { %v1918_v9 = vadd.f32 %v931_v0, %v915_v56 }
0x105c   :  { %1609 = vtanh.f32 %v1916_v8  ;;  %v1025_v56 = vrot.slane %v1916_v8, 7 }
0x105d   :  { %1611 = vtanh.f32 %v1918_v9 }
0x1062   :  { %v1610_v10 = vpop.eup %1609 }
0x1063   :  { %v1612_v11 = vpop.eup %1611  ;;  %940 = vrot.lane.b32.xlu0 %v1610_v10, %s1647_s4 }
0x1064   :  { %942 = vrot.lane.b32.xlu1 %v1612_v11, %s1647_s4 }
0x10d5   :  { %v941_v5 = vpop.permute.xlu0 %940 }
0x10d6   :  { %v943_v63 = vpop.permute.xlu1 %942  ;;  %v946_v12 = vmul.f32 %v941_v5, %v889_v43  ;;  %v1026_v5 = vrot.slane %v1918_v9, 7 }
0x10d7   :  { %v947_v13 = vmul.f32 %v943_v63, %v904_v50 }
0x10d8   :  { %v948_v14 = vpack.c.bf16 %v946_v12, %v946_v12  ;;  %v1213_v15 = vrot.slane %v946_v12, 7 }
0x10d9   :  { %v949_v4 = vpack.c.bf16 %v947_v13, %v947_v13  ;;  %v1214_v62 = vrot.slane %v947_v13, 7 }
0x10da   :  { %v952_v17 = vunpack.c.l.b16 %v948_v14  ;;  %v1925_v18 = vsel %vm1242_vm4, %v1900_v60, %v1213_v15 }
0x10db   :  { %v953_v7 = vunpack.c.l.b16 %v949_v4  ;;  %v1928_v19 = vsel %vm1242_vm4, %v1903_v16, %v1214_v62 }
0x10dc   :  { %v954_v54 = vrot.slane %v952_v17, 5 }
0x10dd   :  { %v955_v20 = vrot.slane %v953_v7, 4 }
0x10df   :  { %v956_v21 = vsel %vm382_vm15, %v955_v20, %v954_v54 }
0x10e0   :  { %v957_v59 = vpack.c.b16 %v956_v21, %v956_v21 }
0x10e2   :  { %958 = vrot.lane.b32.xlu2 %v957_v59, %s1648_s5 }
0x113c   :  { %v959_v22 = vpop.permute.xlu2 %958 }
0x113d   :  { %1472 = vmatmul.msk.bf16.vlgmr.msrb.gmra.mxu0 %vm171_vm2, %v959_v22 }
0x11ba   :  { %v972_v2 = vpop.f32.mrf.mxu0 }
0x11bb   :  { %v977_v23 = vrot.slane %v972_v2, 2  ;;  %v978_v24 = vrot.slane %v972_v2, 3 }
0x11bd   :  { %v981_v60 = vadd.f32 %v977_v23, %v1761_v38  ;;  %v982_v25 = vadd.f32 %v978_v24, %v1763_v40 }
0x11bf   :  { %1613 = vtanh.f32 %v981_v60  ;;  %v1473_v28 = vmul.f32 -1.442695, %v981_v60  ;;  %v1474_v29 = vmul.f32 -1.442695, %v982_v25 }
0x11c0   :  { %1615 = vtanh.f32 %v982_v25 }
0x11c1   :  { %1617 = vpow2.f32 %v1473_v28 }
0x11c2   :  { %v974_v16 = vpop.f32.mrf.mxu0  ;;  %1619 = vpow2.f32 %v1474_v29 }
0x11c5   :  { %v1614_v26 = vpop.eup %1613 }
0x11c6   :  { %v1616_v27 = vpop.eup %1615  ;;  %1033 = vrot.lane.b32.xlu0 %v1614_v26, %s1647_s4 }
0x11c7   :  { %1035 = vrot.lane.b32.xlu1 %v1616_v27, %s1647_s4  ;;  %v1618_v30 = vpop.eup %1617 }
0x11c8   :  { %v1620_v31 = vpop.eup %1619  ;;  %v989_v32 = vadd.f32 1.0, %v1618_v30 }
0x11c9   :  { %v990_v33 = vadd.f32 1.0, %v1620_v31 }
0x11ca   :  { %1621 = vrcp.f32 %v989_v32  ;;  %v1002_v48 = vand.u32 2147483648, %v989_v32  ;;  %vm996_vm7 = vweird.f32 %v989_v32  ;;  %v1000_v52 = vand.u32 2147483647, %v989_v32 }
0x11cb   :  { %1623 = vrcp.f32 %v990_v33  ;;  %v1017_v49 = vand.u32 2147483648, %v990_v33  ;;  %vm1011_vm8 = vweird.f32 %v990_v33  ;;  %v1015_v47 = vand.u32 2147483647, %v990_v33 }
0x11cc   :  { %v1003_v57 = vor.u32 1.1754944e-38, %v1002_v48  ;;  %vm1001_vm11 = vcmp.eq.f32.partialorder %v1000_v52, 8.507059e+37 }
0x11cd   :  { %v1018_v58 = vor.u32 1.1754944e-38, %v1017_v49  ;;  %vm1016_vm12 = vcmp.eq.f32.partialorder %v1015_v47, 8.507059e+37 }
0x11d0   :  { %v1622_v34 = vpop.eup %1621 }
0x11d1   :  { %v1624_v35 = vpop.eup %1623  ;;  %v992_v36 = vmul.f32 %v1622_v34, %v989_v32  ;;  %vm997_vm5 = vweird.f32 %v1622_v34 }
0x11d2   :  { %v1007_v37 = vmul.f32 %v1624_v35, %v990_v33  ;;  %vm1012_vm6 = vweird.f32 %v1624_v35  ;;  %vm998_vm9 = vmor %vm996_vm7, %vm997_vm5 }
0x11d3   :  { %v993_v39 = vsub.f32 1.0, %v992_v36  ;;  %vm1013_vm10 = vmor %vm1011_vm8, %vm1012_vm6 }
0x11d4   :  { %v1008_v41 = vsub.f32 1.0, %v1007_v37 }
0x11d5   :  { %v994_v42 = vmul.f32 %v1622_v34, %v993_v39 }
0x11d6   :  { %v1009_v43 = vmul.f32 %v1624_v35, %v1008_v41 }
0x11d7   :  { %v995_v45 = vadd.f32 %v1622_v34, %v994_v42 }
0x11d8   :  { %v1010_v46 = vadd.f32 %v1624_v35, %v1009_v43 }
0x11d9   :  { %v999_v53 = vsel %vm998_vm9, %v1622_v34, %v995_v45 }
0x11da   :  { %v1014_v55 = vsel %vm1013_vm10, %v1624_v35, %v1010_v46  ;;  %v1004_v50 = vsel %vm1001_vm11, %v1003_v57, %v999_v53 }
0x11db   :  { %v1019_v1 = vsel %vm1016_vm12, %v1018_v58, %v1014_v55  ;;  %v1029_v6 = vmul.f32 %v1025_v56, %v1004_v50 }
0x11dc   :  { %v1030_v63 = vmul.f32 %v1026_v5, %v1019_v1 }
0x1238   :  { %v1034_v61 = vpop.permute.xlu0 %1033 }
0x1239   :  { %v1036_v44 = vpop.permute.xlu1 %1035  ;;  %v1039_v51 = vmul.f32 %v1034_v61, %v1004_v50 }
0x123a   :  { %v1040_v3 = vmul.f32 %v1036_v44, %v1019_v1 }
0x123b   :  { %1043 = vrot.lane.b32.xlu2 %v1039_v51, %s1648_s5 }
0x123c   :  { %1045 = vrot.lane.b32.xlu0 %v1040_v3, %s1648_s5 }
0x1295   :  { %v1044_v0 = vpop.permute.xlu2 %1043 }
0x1296   :  { %v1940_v10 = vadd.f32 %v1044_v0, %v1029_v6 }
0x1298   :  { %1625 = vtanh.f32 %v1940_v10 }
0x129e   :  { %v1626_v11 = vpop.eup %1625 }
0x129f   :  { %1055 = vrot.lane.b32.xlu1 %v1626_v11, %s1647_s4 }
0x12ae   :  { %v1046_v12 = vpop.permute.xlu0 %1045 }
0x12af   :  { %v1945_v13 = vadd.f32 %v1046_v12, %v1030_v63 }
0x12b1   :  { %1627 = vtanh.f32 %v1945_v13 }
0x12b7   :  { %v1628_v14 = vpop.eup %1627 }
0x12b8   :  { %1057 = vrot.lane.b32.xlu2 %v1628_v14, %s1647_s4 }
0x1311   :  { %v1056_v8 = vpop.permute.xlu1 %1055 }
0x1312   :  { %v1058_v15 = vpop.permute.xlu2 %1057  ;;  %v1061_v4 = vmul.f32 %v1056_v8, %v1004_v50 }
0x1313   :  { %v1062_v62 = vmul.f32 %v1058_v15, %v1019_v1 }
0x1314   :  { %v1063_v17 = vpack.c.bf16 %v1061_v4, %v1061_v4  ;;  %v1219_v7 = vrot.slane %v1061_v4, 7 }
0x1315   :  { %v1064_v54 = vpack.c.bf16 %v1062_v62, %v1062_v62 }
0x1316   :  { %v1067_v20 = vunpack.c.l.b16 %v1063_v17  ;;  %v1246_v9 = vsel %vm1245_vm13, %v1925_v18, %v1219_v7  ;;  %v1220_v18 = vrot.slane %v1062_v62, 7 }
0x1317   :  { %v1068_v21 = vunpack.c.l.b16 %v1064_v54  ;;  %v1250_v59 = vrot.slane %v1246_v9, 1  ;;  %v1251_v22 = vrot.slane %v1246_v9, 2  ;;  %1264 = vst [vmem:[#allocation1] ss:$9 sm:$0xff] %v1246_v9  ;;  %v1252_v24 = vrot.slane %v1246_v9, 3 }
0x1318   :  { %v1069_v23 = vrot.slane %v1067_v20, 6  ;;  %v1253_v60 = vrot.slane %v1246_v9, 4  ;;  %v1254_v25 = vrot.slane %v1246_v9, 5  ;;  %v1255_v16 = vrot.slane %v1246_v9, 6 }
0x1319   :  { %v1070_v2 = vrot.slane %v1068_v21, 5  ;;  %1266 = vst [vmem:[#allocation1 + $0x1] ss:$9 sm:$0xff] %v1250_v59  ;;  %v1256_v27 = vrot.slane %v1246_v9, 7  ;;  %v1955_v29 = vsel %vm1245_vm13, %v1928_v19, %v1220_v18  ;;  %v1141_v20 = vrot.slane %v1945_v13, 7 }
0x131a   :  { %1268 = vst [vmem:[#allocation1 + $0x2] ss:$9 sm:$0xff] %v1251_v22  ;;  %v1257_v30 = vrot.slane %v1955_v29, 1  ;;  %v1258_v32 = vrot.slane %v1955_v29, 2  ;;  %v1259_v33 = vrot.slane %v1955_v29, 3  ;;  %v1260_v34 = vrot.slane %v1955_v29, 4 }
0x131b   :  { %v1071_v26 = vsel %vm382_vm15, %v1070_v2, %v1069_v23  ;;  %1270 = vst [vmem:[#allocation1 + $0x3] ss:$9 sm:$0xff] %v1252_v24  ;;  %v1261_v35 = vrot.slane %v1955_v29, 5  ;;  %v1262_v19 = vrot.slane %v1955_v29, 6  ;;  %v1140_v2 = vrot.slane %v1940_v10, 7 }
0x131c   :  { %v1072_v28 = vpack.c.b16 %v1071_v26, %v1071_v26  ;;  %1272 = vst [vmem:[#allocation1 + $0x4] ss:$9 sm:$0xff] %v1253_v60  ;;  %v1263_v18 = vrot.slane %v1955_v29, 7 }
0x131d   :  { %1274 = vst [vmem:[#allocation1 + $0x5] ss:$9 sm:$0xff] %v1254_v25 }
0x131e   :  { %1073 = vrot.lane.b32.xlu0 %v1072_v28, %s1648_s5  ;;  %1276 = vst [vmem:[#allocation1 + $0x6] ss:$9 sm:$0xff] %v1255_v16 }
0x131f   :  { %1278 = vst [vmem:[#allocation1 + $0x7] ss:$9 sm:$0xff] %v1256_v27 }
0x1326   :  { %v1958_v31 = vld [vmem:[#allocation1] sm:$0xff] }
0x1327   :  { %1281 = vst [vmem:[#allocation1 + $0x1] ss:$9 sm:$0xff] %v1955_v29  ;;  %v1492_v29 = vld [vmem:[%s2011_s6] sm:$0xff] }
0x1328   :  { %1282 = vst [vmem:[#allocation1 + $0x2] ss:$9 sm:$0xff] %v1257_v30 }
0x1329   :  { %1283 = vst [vmem:[#allocation1 + $0x3] ss:$9 sm:$0xff] %v1258_v32 }
0x132a   :  { %1284 = vst [vmem:[#allocation1 + $0x4] ss:$9 sm:$0xff] %v1259_v33 }
0x132b   :  { %1285 = vst [vmem:[#allocation1 + $0x5] ss:$9 sm:$0xff] %v1260_v34 }
0x132c   :  { %1286 = vst [vmem:[#allocation1 + $0x6] ss:$9 sm:$0xff] %v1261_v35  ;;  %v1493_v35 = vld [vmem:[%s2011_s6 + $0x8] sm:$0xff] }
0x132d   :  { %1287 = vst [vmem:[#allocation1 + $0x7] ss:$9 sm:$0xff] %v1262_v19  ;;  %1330 = vmatpush.bf16.msra.mxu2 %v1493_v35 }
0x1331   :  { %1331 = vmatpush.bf16.msra.mxu2 %v1492_v29 }
0x1390   :  { %v1074_v36 = vpop.permute.xlu0 %1073 }
0x1391   :  { %1475 = vmatmul.msk.bf16.vlgmr.msrb.gmra.mxu1 %vm171_vm2, %v1074_v36  ;;  %v1508_v36 = vld [vmem:[%s2010_s7] ss:$0 sm:$0xff] }
0x140e   :  { %v1087_v37 = vpop.f32.mrf.mxu1 }
0x140f   :  { %v1092_v39 = vrot.slane %v1087_v37, 1  ;;  %v1093_v41 = vrot.slane %v1087_v37, 2 }
0x1411   :  { %v1096_v42 = vadd.f32 %v1092_v39, %v1761_v38  ;;  %v1097_v43 = vadd.f32 %v1093_v41, %v1763_v40 }
0x1413   :  { %1629 = vtanh.f32 %v1096_v42  ;;  %v1477_v49 = vmul.f32 -1.442695, %v1097_v43  ;;  %v1476_v55 = vmul.f32 -1.442695, %v1096_v42 }
0x1414   :  { %1631 = vtanh.f32 %v1097_v43 }
0x1415   :  { %1633 = vpow2.f32 %v1477_v49 }
0x1416   :  { %v1089_v45 = vpop.f32.mrf.mxu1 }
0x1419   :  { %v1630_v46 = vpop.eup %1629 }
0x141a   :  { %v1632_v48 = vpop.eup %1631  ;;  %1148 = vrot.lane.b32.xlu1 %v1630_v46, %s1647_s4 }
0x141b   :  { %1150 = vrot.lane.b32.xlu2 %v1632_v48, %s1647_s4  ;;  %v1634_v52 = vpop.eup %1633 }
0x141c   :  { %v1105_v47 = vadd.f32 1.0, %v1634_v52 }
0x141e   :  { %1635 = vrcp.f32 %v1105_v47  ;;  %v1132_v44 = vand.u32 2147483648, %v1105_v47  ;;  %vm1126_vm14 = vweird.f32 %v1105_v47  ;;  %v1130_v1 = vand.u32 2147483647, %v1105_v47 }
0x141f   :  { %1637 = vpow2.f32 %v1476_v55 }
0x1420   :  { %v1133_v3 = vor.u32 1.1754944e-38, %v1132_v44  ;;  %vm1131_vm1 = vcmp.eq.f32.partialorder %v1130_v1, 8.507059e+37 }
0x1424   :  { %v1636_v53 = vpop.eup %1635 }
0x1425   :  { %v1122_v57 = vmul.f32 %v1636_v53, %v1105_v47  ;;  %v1638_v40 = vpop.eup %1637  ;;  %vm1127_vm15 = vweird.f32 %v1636_v53 }
0x1426   :  { %v1104_v61 = vadd.f32 1.0, %v1638_v40  ;;  %vm1128_vm0 = vmor %vm1126_vm14, %vm1127_vm15 }
0x1427   :  { %v1123_v38 = vsub.f32 1.0, %v1122_v57 }
0x1428   :  { %1639 = vrcp.f32 %v1104_v61  ;;  %v1117_v8 = vand.u32 2147483648, %v1104_v61  ;;  %vm1111_vm4 = vweird.f32 %v1104_v61  ;;  %v1115_v15 = vand.u32 2147483647, %v1104_v61 }
0x1429   :  { %v1124_v58 = vmul.f32 %v1636_v53, %v1123_v38 }
0x142a   :  { %v1118_v62 = vor.u32 1.1754944e-38, %v1117_v8  ;;  %vm1116_vm6 = vcmp.eq.f32.partialorder %v1115_v15, 8.507059e+37 }
0x142b   :  { %v1125_v50 = vadd.f32 %v1636_v53, %v1124_v58 }
0x142d   :  { %v1129_v51 = vsel %vm1128_vm0, %v1636_v53, %v1125_v50 }
0x142e   :  { %v1134_v6 = vsel %vm1131_vm1, %v1133_v3, %v1129_v51  ;;  %v1640_v0 = vpop.eup %1639 }
0x142f   :  { %v1107_v5 = vmul.f32 %v1640_v0, %v1104_v61  ;;  %vm1112_vm3 = vweird.f32 %v1640_v0  ;;  %v1145_v9 = vmul.f32 %v1141_v20, %v1134_v6 }
0x1430   :  { %vm1113_vm5 = vmor %vm1111_vm4, %vm1112_vm3 }
0x1431   :  { %v1108_v63 = vsub.f32 1.0, %v1107_v5 }
0x1433   :  { %v1109_v12 = vmul.f32 %v1640_v0, %v1108_v63 }
0x1435   :  { %v1110_v14 = vadd.f32 %v1640_v0, %v1109_v12 }
0x1437   :  { %v1114_v4 = vsel %vm1113_vm5, %v1640_v0, %v1110_v14 }
0x1438   :  { %v1119_v7 = vsel %vm1116_vm6, %v1118_v62, %v1114_v4 }
0x1439   :  { %v1144_v23 = vmul.f32 %v1140_v2, %v1119_v7 }
0x1475   :  { %v1151_v56 = vpop.permute.xlu2 %1150 }
0x1476   :  { %v1155_v11 = vmul.f32 %v1151_v56, %v1134_v6 }
0x1478   :  { %1160 = vrot.lane.b32.xlu1 %v1155_v11, %s1648_s5 }
0x148c   :  { %v1149_v17 = vpop.permute.xlu1 %1148 }
0x148d   :  { %v1154_v54 = vmul.f32 %v1149_v17, %v1119_v7 }
0x148f   :  { %1158 = vrot.lane.b32.xlu0 %v1154_v54, %s1648_s5 }
0x14ea   :  { %v1161_v21 = vpop.permute.xlu1 %1160 }
0x14eb   :  { %v1165_v59 = vadd.f32 %v1161_v21, %v1145_v9 }
0x14ed   :  { %1641 = vtanh.f32 %v1165_v59 }
0x14f3   :  { %v1642_v22 = vpop.eup %1641 }
0x14f4   :  { %1172 = vrot.lane.b32.xlu0 %v1642_v22, %s1647_s4 }
0x1501   :  { %v1159_v24 = vpop.permute.xlu0 %1158 }
0x1502   :  { %v1164_v60 = vadd.f32 %v1159_v24, %v1144_v23 }
0x1504   :  { %1643 = vtanh.f32 %v1164_v60 }
0x150a   :  { %v1644_v25 = vpop.eup %1643 }
0x150b   :  { %1170 = vrot.lane.b32.xlu2 %v1644_v25, %s1647_s4 }
0x1565   :  { %v1171_v16 = vpop.permute.xlu2 %1170 }
0x1566   :  { %v1176_v26 = vmul.f32 %v1171_v16, %v1119_v7  ;;  %v1173_v13 = vpop.permute.xlu0 %1172 }
0x1567   :  { %v1177_v28 = vmul.f32 %v1173_v13, %v1134_v6 }
0x1568   :  { %v1225_v27 = vrot.slane %v1176_v26, 7 }
0x1569   :  { %v1226_v30 = vrot.slane %v1177_v28, 7 }
0x156a   :  { %1280 = vst [vmem:[#allocation1] ss:$9 sm:$0xff] %v1225_v27 }
0x1571   :  { %v1288_v32 = vld [vmem:[#allocation1] sm:$0xff] }
0x1572   :  { %1289 = vst [vmem:[#allocation1] ss:$9 sm:$0xff] %v1263_v18  ;;  %v1295_v10 = vpack.c.bf16 %v1288_v32, %v1958_v31 }
0x1573   :  { %1290 = vst [vmem:[#allocation1 + $0x1] ss:$9 sm:$0xff] %v1226_v30 }
0x1574   :  { %1302 = vrot.lane.b32.xlu1 %v1295_v10, %s1648_s5 }
0x157a   :  { %v1291_v33 = vld [vmem:[#allocation1] sm:$0xff] }
0x157b   :  { %v1296_v34 = vpack.c.bf16 %v1291_v33, %v1291_v33 }
0x157d   :  { %1304 = vrot.lane.b32.xlu2 %v1296_v34, %s1648_s5 }
0x15d7   :  { %v1305_v31 = vpop.permute.xlu2 %1304 }
0x15e6   :  { %v1303_v19 = vpop.permute.xlu1 %1302 }
0x15e7   :  { %1486 = vmatmul.msk.bf16.vlgmr.msra.gmra.mxu2 %vm171_vm2, %v1303_v19 }
0x15f7   :  { %1487 = vmatmul.msk.bf16.gmra.mxu2 %vm171_vm2, %v1305_v31 }
0x166a   :  { %v1333_v37 = vpop.f32.mrf.mxu2 }
0x166b   :  { %v1334_v39 = vadd.f32 %v1508_v36, %v1333_v37 }
0x166d   :  { %v1345_v41 = vrot.slane %v1334_v39, 1  ;;  %v1346_v42 = vrot.slane %v1334_v39, 2  ;;  %v1347_v43 = vrot.slane %v1334_v39, 3  ;;  %1360 = vst [vmem:[#allocation1] ss:$9 sm:$0xff] %v1334_v39  ;;  %v1348_v45 = vrot.slane %v1334_v39, 4 }
0x166e   :  { %v1349_v46 = vrot.slane %v1334_v39, 5  ;;  %v1350_v48 = vrot.slane %v1334_v39, 6  ;;  %v1351_v49 = vrot.slane %v1334_v39, 7 }
0x166f   :  { %1362 = vst [vmem:[#allocation1 + $0x1] ss:$9 sm:$0xff] %v1345_v41 }
0x1670   :  { %1364 = vst [vmem:[#allocation1 + $0x2] ss:$9 sm:$0xff] %v1346_v42 }
0x1671   :  { %1366 = vst [vmem:[#allocation1 + $0x3] ss:$9 sm:$0xff] %v1347_v43 }
0x1672   :  { %1368 = vst [vmem:[#allocation1 + $0x4] ss:$9 sm:$0xff] %v1348_v45  ;;  %v1335_v52 = vpop.f32.mrf.mxu2 }
0x1673   :  { %1370 = vst [vmem:[#allocation1 + $0x5] ss:$9 sm:$0xff] %v1349_v46  ;;  %v1336_v53 = vadd.f32 %v1508_v36, %v1335_v52 }
0x1674   :  { %1372 = vst [vmem:[#allocation1 + $0x6] ss:$9 sm:$0xff] %v1350_v48 }
0x1675   :  { %1374 = vst [vmem:[#allocation1 + $0x7] ss:$9 sm:$0xff] %v1351_v49  ;;  %v1352_v38 = vrot.slane %v1336_v53, 1  ;;  %v1353_v40 = vrot.slane %v1336_v53, 2  ;;  %v1354_v61 = vrot.slane %v1336_v53, 3  ;;  %v1355_v50 = vrot.slane %v1336_v53, 4 }
0x1676   :  { %v1356_v44 = vrot.slane %v1336_v53, 5  ;;  %v1357_v1 = vrot.slane %v1336_v53, 6  ;;  %v1358_v51 = vrot.slane %v1336_v53, 7 }
0x167a   :  { %v1338_v47 = vpop.f32.mrf.mxu2 }
0x167b   :  { %v1339_v3 = vadd.f32 %v1508_v36, %v1338_v47 }
0x167c   :  { %v1375_v55 = vld [vmem:[#allocation1] sm:$0xff] }
0x167d   :  { %1376 = vst [vmem:[#allocation1] ss:$9 sm:$0xff] %v1336_v53  ;;  %v1359_v56 = vrot.slane %v1339_v3, 1 }
0x167e   :  { %1393 = vst [vmem:[%s2012_s8] sm:$0xff] %v1375_v55 }
0x1682   :  { %v1340_v57 = vpop.f32.mrf.mxu2 }
0x1684   :  { %v1377_v58 = vld [vmem:[#allocation1] sm:$0xff] }
0x1685   :  { %1378 = vst [vmem:[#allocation1] ss:$9 sm:$0xff] %v1352_v38 }
0x1686   :  { %1379 = vst [vmem:[#allocation1 + $0x1] ss:$9 sm:$0xff] %v1353_v40 }
0x1687   :  { %1380 = vst [vmem:[#allocation1 + $0x2] ss:$9 sm:$0xff] %v1354_v61 }
0x1688   :  { %1381 = vst [vmem:[#allocation1 + $0x3] ss:$9 sm:$0xff] %v1355_v50 }
0x1689   :  { %1382 = vst [vmem:[#allocation1 + $0x4] ss:$9 sm:$0xff] %v1356_v44 }
0x168a   :  { %1383 = vst [vmem:[#allocation1 + $0x5] ss:$9 sm:$0xff] %v1357_v1 }
0x168b   :  { %1384 = vst [vmem:[#allocation1 + $0x6] ss:$9 sm:$0xff] %v1358_v51 }
0x168c   :  { %1385 = vst [vmem:[#allocation1 + $0x7] ss:$9 sm:$0xff] %v1339_v3 }
0x168d   :  { %1394 = vst [vmem:[%s2012_s8 + $0x8] sm:$0x1] %v1377_v58 }
0x1693   :  { %v1386_v6 = vld [vmem:[#allocation1] sm:$0xff] }
0x1694   :  { %1387 = vst [vmem:[#allocation1] ss:$9 sm:$0xff] %v1359_v56 }
0x1695   :  { %1395 = vst [vmem:[%s2012_s8 + $0x10] sm:$0xff] %v1386_v6 }
0x169b   :  { %v1388_v0 = vld [vmem:[#allocation1] sm:$0xff] }
0x169c   :  { %1396 = vst [vmem:[%s2012_s8 + $0x18] sm:$0x1] %v1388_v0 }

</bundles_post_ra>
